<compile_context>
chip_gen: v7x
topology: tpu7x:2x2x1
jax: 0.10.0
libtpu: 0.0.40
codegen_flags: <defaults>
</compile_context>

<pallas_src>
import jax
import jax.numpy as jnp
from jax import lax
from jax.experimental import pallas as pl
from jax.experimental.pallas import tpu as pltpu

EPS = 1e-5


# ----------------------------------------------------------------------------
# Fused Pallas kernel: conv1 -> BN -> ReLU -> conv2 -> BN -> ReLU ->
#                      (phase-decomposed) deconv -> bias -> BN -> ReLU
# ----------------------------------------------------------------------------
def _centerblock_kernel(x_ref, w1_ref, w2_ref, w3_ref,
                        s1_ref, b1_ref, s2_ref, b2_ref, s3_ref, b3_ref,
                        o_ref, xp_ref, yp_ref):
    # x_ref : (1, H, W*Cin)            lane-dense input (one image)
    # w1_ref: (3, W*Cin,  W*mid)       width-banded conv1 weights (per row tap)
    # w2_ref: (3, W*mid,  W*mid)       width-banded conv2 weights
    # w3_ref: (4, 2, W*mid, W*Cout)    per output phase (py*2+px), per row tap
    # s*_ref/b*_ref: (1, W*C)          folded BN scale / bias, tiled along W
    # o_ref : (1, 4, H, W*Cout)        4 deconv output phases
    # xp_ref: (H+2, W*Cin)  scratch    row-padded stage-1 input
    # yp_ref: (H+2, W*mid)  scratch    row-padded stage-2/3 input
    H = x_ref.shape[1]

    def banded_conv(src_ref, taps):
        acc = None
        for off, w2d in taps:
            part = jnp.dot(src_ref[off:off + H, :], w2d,
                           preferred_element_type=jnp.float32)
            acc = part if acc is None else acc + part
        return acc

    # ---- stage 1: Conv3x3(Cin -> mid) + BN + ReLU ---------------------------
    xp_ref[...] = jnp.zeros_like(xp_ref)
    xp_ref[1:H + 1, :] = x_ref[0].astype(jnp.float32)
    acc = banded_conv(xp_ref, [(k, w1_ref[k]) for k in range(3)])
    y1 = jnp.maximum(acc * s1_ref[...] + b1_ref[...], 0.0)

    # ---- stage 2: Conv3x3(mid -> mid) + BN + ReLU ---------------------------
    yp_ref[...] = jnp.zeros_like(yp_ref)
    yp_ref[1:H + 1, :] = y1
    acc = banded_conv(yp_ref, [(k, w2_ref[k]) for k in range(3)])
    y2 = jnp.maximum(acc * s2_ref[...] + b2_ref[...], 0.0)

    # ---- stage 3: ConvTranspose2d(4x4, s=2, p=1) + bias + BN + ReLU ---------
    # phase ph = 2*py + px; each phase is a 2-row-tap banded conv on y2.
    yp_ref[1:H + 1, :] = y2            # boundary rows stay zero
    for ph in range(4):
        py = ph // 2
        acc = banded_conv(yp_ref,
                          [(py, w3_ref[ph, 0]), (py + 1, w3_ref[ph, 1])])
        y3 = jnp.maximum(acc * s3_ref[...] + b3_ref[...], 0.0)
        o_ref[0, ph, :, :] = y3.astype(o_ref.dtype)


# ----------------------------------------------------------------------------
# Wrapper-side weight flattening: width-band matrices
# ----------------------------------------------------------------------------
def _width_band(taps, width, dtype=jnp.float32):
    """Build a (width*Cin, width*Cout) band matrix.

    taps: list of (offset, w_io) pairs with w_io of shape (Cin, Cout); output
    column block wo receives input column block wi = wo + offset (taps that
    fall outside [0, width) are dropped == zero padding)."""
    wo = jnp.arange(width)
    wi = jnp.arange(width)
    cin, cout = taps[0][1].shape
    band = jnp.zeros((width, cin, width, cout), dtype)
    for off, w_io in taps:
        m = (wi[:, None] == wo[None, :] + off).astype(dtype)      # (Win, Wout)
        band = band + jnp.einsum('ab,io->aibo', m, w_io.astype(dtype))
    return band.reshape(width * cin, width * cout)


# ----------------------------------------------------------------------------
# CenterBlock forward (Pallas)
# ----------------------------------------------------------------------------
def centerblock_forward(x_nchw, p):
    N, Cin, H, W = x_nchw.shape
    mid = p["w1"].shape[3]
    Cout = p["w3_t"].shape[1]

    # Fold BN (eval mode) into per-channel scale/bias, tiled along W (lanes).
    def fold(gamma, beta, mean, var, extra_bias=None):
        s = gamma / jnp.sqrt(var + EPS)
        b = beta - mean * s
        if extra_bias is not None:
            b = b + extra_bias * s          # fold deconv bias into BN bias
        return s, b

    s1, b1 = fold(p["g1"], p["be1"], p["m1"], p["v1"])
    s2, b2 = fold(p["g2"], p["be2"], p["m2"], p["v2"])
    s3, b3 = fold(p["g3"], p["be3"], p["m3"], p["v3"], extra_bias=p["b3"])

    s1t = jnp.tile(s1, W).reshape(1, W * mid)
    b1t = jnp.tile(b1, W).reshape(1, W * mid)
    s2t = jnp.tile(s2, W).reshape(1, W * mid)
    b2t = jnp.tile(b2, W).reshape(1, W * mid)
    s3t = jnp.tile(s3, W).reshape(1, W * Cout)
    b3t = jnp.tile(b3, W).reshape(1, W * Cout)

    # Pre-flatten conv weights into width-band matrices (one per row tap).
    w1 = p["w1"]                                   # (3,3,Cin,mid)  HWIO
    w2 = p["w2"]                                   # (3,3,mid,mid)
    W1b = jnp.stack([_width_band([(kw - 1, w1[kh, kw]) for kw in range(3)], W)
                     for kh in range(3)])          # (3, W*Cin, W*mid)
    W2b = jnp.stack([_width_band([(kw - 1, w2[kh, kw]) for kw in range(3)], W)
                     for kh in range(3)])          # (3, W*mid, W*mid)

    # ConvTranspose2d(k=4, s=2, p=1) == conv of the zero-inserted input with
    # the spatially flipped kernel; phase-decompose into 4 x (2x2) sub-convs:
    #   out[2q+py, 2r+px] = sum_{a,b in {0,1}} x[q+py+a-1, r+px+b-1] * wc[2a+py, 2b+px]
    wc = jnp.transpose(p["w3_t"], (2, 3, 0, 1))[::-1, ::-1]   # (4,4,mid,Cout)
    W3b = jnp.stack([
        jnp.stack([_width_band([(px + b - 1, wc[2 * a + py, 2 * b + px])
                                for b in range(2)], W)
                   for a in range(2)])
        for py in range(2) for px in range(2)])    # (4, 2, W*mid, W*Cout)

    # NCHW -> lane-dense (N, H, W*Cin)
    x2d = jnp.transpose(x_nchw, (0, 2, 3, 1)).reshape(N, H, W * Cin)

    out = pl.pallas_call(
        _centerblock_kernel,
        out_shape=jax.ShapeDtypeStruct((N, 4, H, W * Cout), jnp.float32),
        grid=(N,),
        in_specs=[
            pl.BlockSpec((1, H, W * Cin), lambda n: (n, 0, 0)),
            pl.BlockSpec((3, W * Cin, W * mid), lambda n: (0, 0, 0)),
            pl.BlockSpec((3, W * mid, W * mid), lambda n: (0, 0, 0)),
            pl.BlockSpec((4, 2, W * mid, W * Cout), lambda n: (0, 0, 0, 0)),
            pl.BlockSpec((1, W * mid), lambda n: (0, 0)),
            pl.BlockSpec((1, W * mid), lambda n: (0, 0)),
            pl.BlockSpec((1, W * mid), lambda n: (0, 0)),
            pl.BlockSpec((1, W * mid), lambda n: (0, 0)),
            pl.BlockSpec((1, W * Cout), lambda n: (0, 0)),
            pl.BlockSpec((1, W * Cout), lambda n: (0, 0)),
        ],
        out_specs=pl.BlockSpec((1, 4, H, W * Cout), lambda n: (n, 0, 0, 0)),
        scratch_shapes=[pltpu.VMEM((H + 2, W * Cin), jnp.float32),
                        pltpu.VMEM((H + 2, W * mid), jnp.float32)],
        compiler_params=pltpu.CompilerParams(
            dimension_semantics=("parallel",)),
    )(x2d, W1b, W2b, W3b, s1t, b1t, s2t, b2t, s3t, b3t)

    # Interleave the 4 deconv phases and return NCHW.
    out = out.reshape(N, 2, 2, H, W, Cout)                      # (n,py,px,q,r,c)
    out = jnp.transpose(out, (0, 5, 3, 1, 4, 2))                # (n,c,q,py,r,px)
    return out.reshape(N, Cout, 2 * H, 2 * W)


# ----------------------------------------------------------------------------
# Pure-JAX reference (lax conv) for correctness check
# ----------------------------------------------------------------------------
def centerblock_reference(x_nchw, p):
    dn = ("NHWC", "HWIO", "NHWC")

    def bn_relu(y, g, be, m, v):
        s = g / jnp.sqrt(v + EPS)
        return jnp.maximum(y * s + (be - m * s), 0.0)

    x = jnp.transpose(x_nchw, (0, 2, 3, 1))
    y = lax.conv_general_dilated(x, p["w1"], (1, 1), ((1, 1), (1, 1)),
                                 dimension_numbers=dn)
    y = bn_relu(y, p["g1"], p["be1"], p["m1"], p["v1"])
    y = lax.conv_general_dilated(y, p["w2"], (1, 1), ((1, 1), (1, 1)),
                                 dimension_numbers=dn)
    y = bn_relu(y, p["g2"], p["be2"], p["m2"], p["v2"])
    w3c = jnp.transpose(p["w3_t"], (2, 3, 0, 1))[::-1, ::-1]
    y = lax.conv_general_dilated(y, w3c, (1, 1), ((2, 2), (2, 2)),
                                 lhs_dilation=(2, 2), dimension_numbers=dn)
    y = y + p["b3"]
    y = bn_relu(y, p["g3"], p["be3"], p["m3"], p["v3"])
    return jnp.transpose(y, (0, 3, 1, 2))


# ----------------------------------------------------------------------------
# Deterministic parameter init (synthetic; no checkpoint load)
# ----------------------------------------------------------------------------
def init_params(key, cin, cout):
    mid = 2 * cin
    ks = jax.random.split(key, 8)

    def bn(k, c):
        k1, k2, k3, k4 = jax.random.split(k, 4)
        return (jax.random.uniform(k1, (c,), jnp.float32, 0.5, 1.5),   # gamma
                jax.random.normal(k2, (c,), jnp.float32) * 0.1,        # beta
                jax.random.normal(k3, (c,), jnp.float32) * 0.1,        # running_mean
                jax.random.uniform(k4, (c,), jnp.float32, 0.5, 1.5))   # running_var

    p = {}
    p["w1"] = jax.random.normal(ks[0], (3, 3, cin, mid), jnp.float32) * 0.2
    p["g1"], p["be1"], p["m1"], p["v1"] = bn(ks[1], mid)
    p["w2"] = jax.random.normal(ks[2], (3, 3, mid, mid), jnp.float32) * 0.2
    p["g2"], p["be2"], p["m2"], p["v2"] = bn(ks[3], mid)
    # ConvTranspose2d weight in PyTorch layout (Cin, Cout, K, K)
    p["w3_t"] = jax.random.normal(ks[4], (mid, cout, 4, 4), jnp.float32) * 0.2
    p["b3"] = jax.random.normal(ks[5], (cout,), jnp.float32) * 0.1
    p["g3"], p["be3"], p["m3"], p["v3"] = bn(ks[6], cout)
    return p


if __name__ == "__main__":
    key = jax.random.PRNGKey(0)
    kx, kp = jax.random.split(key)

    N, Cin, H, W = 2, 4, 16, 16
    Cout = 4
    x = jax.random.normal(kx, (N, Cin, H, W), jnp.float32)
    params = init_params(kp, Cin, Cout)

    out = jax.jit(centerblock_forward)(x, params)
    out = jax.block_until_ready(out)
    assert out.shape == (N, Cout, 2 * H, 2 * W), out.shape

    ref = jax.jit(centerblock_reference)(x, params)
    ref = jax.block_until_ready(ref)
    assert jnp.allclose(out, ref, atol=2e-4, rtol=2e-4), (
        float(jnp.max(jnp.abs(out - ref))))

    print("KERNEL_OK")
</pallas_src>

<mosaic_0001>
module attributes {stable_mosaic.version = 11 : i64} {
  func.func @_centerblock_kernel(%arg0: i32, %arg1: memref<1x16x64xf32, #tpu.memory_space<vmem>>, %arg2: memref<3x64x128xf32, #tpu.memory_space<vmem>>, %arg3: memref<3x128x128xf32, #tpu.memory_space<vmem>>, %arg4: memref<4x2x128x64xf32, #tpu.memory_space<vmem>>, %arg5: memref<1x128xf32, #tpu.memory_space<vmem>>, %arg6: memref<1x128xf32, #tpu.memory_space<vmem>>, %arg7: memref<1x128xf32, #tpu.memory_space<vmem>>, %arg8: memref<1x128xf32, #tpu.memory_space<vmem>>, %arg9: memref<1x64xf32, #tpu.memory_space<vmem>>, %arg10: memref<1x64xf32, #tpu.memory_space<vmem>>, %arg11: memref<1x4x16x64xf32, #tpu.memory_space<vmem>>, %arg12: memref<18x64xf32, #tpu.memory_space<vmem>>, %arg13: memref<18x128xf32, #tpu.memory_space<vmem>>) attributes {dimension_semantics = [#tpu.dimension_semantics<parallel>], iteration_bounds = array<i64: 2>, scalar_prefetch = 0 : i64, scratch_operands = 2 : i64, tpu.core_type = #tpu.core_type<tc>, window_params = [{transform_indices = @transform_0, window_bounds = array<i64: 1, 16, 64>}, {pipeline_mode = #tpu.pipeline_mode<synchronous>, transform_indices = @transform_1, window_bounds = array<i64: 3, 64, 128>}, {pipeline_mode = #tpu.pipeline_mode<synchronous>, transform_indices = @transform_2, window_bounds = array<i64: 3, 128, 128>}, {pipeline_mode = #tpu.pipeline_mode<synchronous>, transform_indices = @transform_3, window_bounds = array<i64: 4, 2, 128, 64>}, {pipeline_mode = #tpu.pipeline_mode<synchronous>, transform_indices = @transform_4, window_bounds = array<i64: 1, 128>}, {pipeline_mode = #tpu.pipeline_mode<synchronous>, transform_indices = @transform_5, window_bounds = array<i64: 1, 128>}, {pipeline_mode = #tpu.pipeline_mode<synchronous>, transform_indices = @transform_6, window_bounds = array<i64: 1, 128>}, {pipeline_mode = #tpu.pipeline_mode<synchronous>, transform_indices = @transform_7, window_bounds = array<i64: 1, 128>}, {pipeline_mode = #tpu.pipeline_mode<synchronous>, transform_indices = @transform_8, window_bounds = array<i64: 1, 64>}, {pipeline_mode = #tpu.pipeline_mode<synchronous>, transform_indices = @transform_9, window_bounds = array<i64: 1, 64>}, {transform_indices = @transform_10, window_bounds = array<i64: 1, 4, 16, 64>}]} {
    %cst = arith.constant 0.000000e+00 : f32
    %0 = vector.broadcast %cst : f32 to vector<18x64xf32>
    %c0 = arith.constant 0 : index
    %c0_0 = arith.constant 0 : index
    %1 = vector.load %arg12[%c0, %c0_0] : memref<18x64xf32, #tpu.memory_space<vmem>>, vector<18x64xf32>
    tpu.vector_store %arg12[%c0, %c0_0], %0 {strides = array<i32>} : memref<18x64xf32, #tpu.memory_space<vmem>>, vector<18x64xf32>,
    %c0_1 = arith.constant 0 : index
    %c0_2 = arith.constant 0 : index
    %c0_3 = arith.constant 0 : index
    %2 = vector.load %arg1[%c0_1, %c0_2, %c0_3] : memref<1x16x64xf32, #tpu.memory_space<vmem>>, vector<1x16x64xf32>
    %3 = vector.shape_cast %2 : vector<1x16x64xf32> to vector<16x64xf32>
    %c1 = arith.constant 1 : index
    %c0_4 = arith.constant 0 : index
    %4 = vector.load %arg12[%c1, %c0_4] : memref<18x64xf32, #tpu.memory_space<vmem>>, vector<16x64xf32>
    tpu.vector_store %arg12[%c1, %c0_4], %3 {strides = array<i32>} : memref<18x64xf32, #tpu.memory_space<vmem>>, vector<16x64xf32>,
    %c0_5 = arith.constant 0 : index
    %c0_6 = arith.constant 0 : index
    %c0_7 = arith.constant 0 : index
    %5 = vector.load %arg2[%c0_5, %c0_6, %c0_7] : memref<3x64x128xf32, #tpu.memory_space<vmem>>, vector<1x64x128xf32>
    %6 = vector.shape_cast %5 : vector<1x64x128xf32> to vector<64x128xf32>
    %c1_8 = arith.constant 1 : index
    %c0_9 = arith.constant 0 : index
    %c0_10 = arith.constant 0 : index
    %7 = vector.load %arg2[%c1_8, %c0_9, %c0_10] : memref<3x64x128xf32, #tpu.memory_space<vmem>>, vector<1x64x128xf32>
    %8 = vector.shape_cast %7 : vector<1x64x128xf32> to vector<64x128xf32>
    %c2 = arith.constant 2 : index
    %c0_11 = arith.constant 0 : index
    %c0_12 = arith.constant 0 : index
    %9 = vector.load %arg2[%c2, %c0_11, %c0_12] : memref<3x64x128xf32, #tpu.memory_space<vmem>>, vector<1x64x128xf32>
    %10 = vector.shape_cast %9 : vector<1x64x128xf32> to vector<64x128xf32>
    %c0_13 = arith.constant 0 : index
    %c0_14 = arith.constant 0 : index
    %11 = vector.load %arg12[%c0_13, %c0_14] : memref<18x64xf32, #tpu.memory_space<vmem>>, vector<16x64xf32>
    %cst_15 = arith.constant dense<0.000000e+00> : vector<16x128xf32>
    %12 = tpu.matmul %11, %6, %cst_15 {dimension_numbers = #tpu.dot_dimension_numbers<[1], [0], [0], [1], [0, 0, 1, 1], [], []>} : vector<16x64xf32>, vector<64x128xf32>, vector<16x128xf32> -> vector<16x128xf32>
    %c1_16 = arith.constant 1 : index
    %c0_17 = arith.constant 0 : index
    %13 = vector.load %arg12[%c1_16, %c0_17] : memref<18x64xf32, #tpu.memory_space<vmem>>, vector<16x64xf32>
    %cst_18 = arith.constant dense<0.000000e+00> : vector<16x128xf32>
    %14 = tpu.matmul %13, %8, %cst_18 {dimension_numbers = #tpu.dot_dimension_numbers<[1], [0], [0], [1], [0, 0, 1, 1], [], []>} : vector<16x64xf32>, vector<64x128xf32>, vector<16x128xf32> -> vector<16x128xf32>
    %15 = arith.addf %12, %14 : vector<16x128xf32>
    %c2_19 = arith.constant 2 : index
    %c0_20 = arith.constant 0 : index
    %16 = vector.load %arg12[%c2_19, %c0_20] : memref<18x64xf32, #tpu.memory_space<vmem>>, vector<16x64xf32>
    %cst_21 = arith.constant dense<0.000000e+00> : vector<16x128xf32>
    %17 = tpu.matmul %16, %10, %cst_21 {dimension_numbers = #tpu.dot_dimension_numbers<[1], [0], [0], [1], [0, 0, 1, 1], [], []>} : vector<16x64xf32>, vector<64x128xf32>, vector<16x128xf32> -> vector<16x128xf32>
    %18 = arith.addf %15, %17 : vector<16x128xf32>
    %c0_22 = arith.constant 0 : index
    %c0_23 = arith.constant 0 : index
    %19 = vector.load %arg5[%c0_22, %c0_23] : memref<1x128xf32, #tpu.memory_space<vmem>>, vector<1x128xf32>
    %20 = vector.broadcast %19 : vector<1x128xf32> to vector<16x128xf32>
    %21 = arith.mulf %18, %20 : vector<16x128xf32>
    %c0_24 = arith.constant 0 : index
    %c0_25 = arith.constant 0 : index
    %22 = vector.load %arg6[%c0_24, %c0_25] : memref<1x128xf32, #tpu.memory_space<vmem>>, vector<1x128xf32>
    %23 = vector.broadcast %22 : vector<1x128xf32> to vector<16x128xf32>
    %24 = arith.addf %21, %23 : vector<16x128xf32>
    %cst_26 = arith.constant 0.000000e+00 : f32
    %25 = vector.broadcast %cst_26 : f32 to vector<16x128xf32>
    %26 = arith.maximumf %24, %25 : vector<16x128xf32>
    %cst_27 = arith.constant 0.000000e+00 : f32
    %27 = vector.broadcast %cst_27 : f32 to vector<18x128xf32>
    %c0_28 = arith.constant 0 : index
    %c0_29 = arith.constant 0 : index
    %28 = vector.load %arg13[%c0_28, %c0_29] : memref<18x128xf32, #tpu.memory_space<vmem>>, vector<18x128xf32>
    tpu.vector_store %arg13[%c0_28, %c0_29], %27 {strides = array<i32>} : memref<18x128xf32, #tpu.memory_space<vmem>>, vector<18x128xf32>,
    %c1_30 = arith.constant 1 : index
    %c0_31 = arith.constant 0 : index
    %29 = vector.load %arg13[%c1_30, %c0_31] : memref<18x128xf32, #tpu.memory_space<vmem>>, vector<16x128xf32>
    tpu.vector_store %arg13[%c1_30, %c0_31], %26 {strides = array<i32>} : memref<18x128xf32, #tpu.memory_space<vmem>>, vector<16x128xf32>,
    %c0_32 = arith.constant 0 : index
    %c0_33 = arith.constant 0 : index
    %c0_34 = arith.constant 0 : index
    %30 = vector.load %arg3[%c0_32, %c0_33, %c0_34] : memref<3x128x128xf32, #tpu.memory_space<vmem>>, vector<1x128x128xf32>
    %31 = vector.shape_cast %30 : vector<1x128x128xf32> to vector<128x128xf32>
    %c1_35 = arith.constant 1 : index
    %c0_36 = arith.constant 0 : index
    %c0_37 = arith.constant 0 : index
    %32 = vector.load %arg3[%c1_35, %c0_36, %c0_37] : memref<3x128x128xf32, #tpu.memory_space<vmem>>, vector<1x128x128xf32>
    %33 = vector.shape_cast %32 : vector<1x128x128xf32> to vector<128x128xf32>
    %c2_38 = arith.constant 2 : index
    %c0_39 = arith.constant 0 : index
    %c0_40 = arith.constant 0 : index
    %34 = vector.load %arg3[%c2_38, %c0_39, %c0_40] : memref<3x128x128xf32, #tpu.memory_space<vmem>>, vector<1x128x128xf32>
    %35 = vector.shape_cast %34 : vector<1x128x128xf32> to vector<128x128xf32>
    %c0_41 = arith.constant 0 : index
    %c0_42 = arith.constant 0 : index
    %36 = vector.load %arg13[%c0_41, %c0_42] : memref<18x128xf32, #tpu.memory_space<vmem>>, vector<16x128xf32>
    %cst_43 = arith.constant dense<0.000000e+00> : vector<16x128xf32>
    %37 = tpu.matmul %36, %31, %cst_43 {dimension_numbers = #tpu.dot_dimension_numbers<[1], [0], [0], [1], [0, 0, 1, 1], [], []>} : vector<16x128xf32>, vector<128x128xf32>, vector<16x128xf32> -> vector<16x128xf32>
    %c1_44 = arith.constant 1 : index
    %c0_45 = arith.constant 0 : index
    %38 = vector.load %arg13[%c1_44, %c0_45] : memref<18x128xf32, #tpu.memory_space<vmem>>, vector<16x128xf32>
    %cst_46 = arith.constant dense<0.000000e+00> : vector<16x128xf32>
    %39 = tpu.matmul %38, %33, %cst_46 {dimension_numbers = #tpu.dot_dimension_numbers<[1], [0], [0], [1], [0, 0, 1, 1], [], []>} : vector<16x128xf32>, vector<128x128xf32>, vector<16x128xf32> -> vector<16x128xf32>
    %40 = arith.addf %37, %39 : vector<16x128xf32>
    %c2_47 = arith.constant 2 : index
    %c0_48 = arith.constant 0 : index
    %41 = vector.load %arg13[%c2_47, %c0_48] : memref<18x128xf32, #tpu.memory_space<vmem>>, vector<16x128xf32>
    %cst_49 = arith.constant dense<0.000000e+00> : vector<16x128xf32>
    %42 = tpu.matmul %41, %35, %cst_49 {dimension_numbers = #tpu.dot_dimension_numbers<[1], [0], [0], [1], [0, 0, 1, 1], [], []>} : vector<16x128xf32>, vector<128x128xf32>, vector<16x128xf32> -> vector<16x128xf32>
    %43 = arith.addf %40, %42 : vector<16x128xf32>
    %c0_50 = arith.constant 0 : index
    %c0_51 = arith.constant 0 : index
    %44 = vector.load %arg7[%c0_50, %c0_51] : memref<1x128xf32, #tpu.memory_space<vmem>>, vector<1x128xf32>
    %45 = vector.broadcast %44 : vector<1x128xf32> to vector<16x128xf32>
    %46 = arith.mulf %43, %45 : vector<16x128xf32>
    %c0_52 = arith.constant 0 : index
    %c0_53 = arith.constant 0 : index
    %47 = vector.load %arg8[%c0_52, %c0_53] : memref<1x128xf32, #tpu.memory_space<vmem>>, vector<1x128xf32>
    %48 = vector.broadcast %47 : vector<1x128xf32> to vector<16x128xf32>
    %49 = arith.addf %46, %48 : vector<16x128xf32>
    %cst_54 = arith.constant 0.000000e+00 : f32
    %50 = vector.broadcast %cst_54 : f32 to vector<16x128xf32>
    %51 = arith.maximumf %49, %50 : vector<16x128xf32>
    %c1_55 = arith.constant 1 : index
    %c0_56 = arith.constant 0 : index
    %52 = vector.load %arg13[%c1_55, %c0_56] : memref<18x128xf32, #tpu.memory_space<vmem>>, vector<16x128xf32>
    tpu.vector_store %arg13[%c1_55, %c0_56], %51 {strides = array<i32>} : memref<18x128xf32, #tpu.memory_space<vmem>>, vector<16x128xf32>,
    %c0_57 = arith.constant 0 : index
    %c0_58 = arith.constant 0 : index
    %c0_59 = arith.constant 0 : index
    %c0_60 = arith.constant 0 : index
    %53 = vector.load %arg4[%c0_57, %c0_58, %c0_59, %c0_60] : memref<4x2x128x64xf32, #tpu.memory_space<vmem>>, vector<1x1x128x64xf32>
    %54 = vector.shape_cast %53 : vector<1x1x128x64xf32> to vector<128x64xf32>
    %c0_61 = arith.constant 0 : index
    %c1_62 = arith.constant 1 : index
    %c0_63 = arith.constant 0 : index
    %c0_64 = arith.constant 0 : index
    %55 = vector.load %arg4[%c0_61, %c1_62, %c0_63, %c0_64] : memref<4x2x128x64xf32, #tpu.memory_space<vmem>>, vector<1x1x128x64xf32>
    %56 = vector.shape_cast %55 : vector<1x1x128x64xf32> to vector<128x64xf32>
    %c0_65 = arith.constant 0 : index
    %c0_66 = arith.constant 0 : index
    %57 = vector.load %arg13[%c0_65, %c0_66] : memref<18x128xf32, #tpu.memory_space<vmem>>, vector<16x128xf32>
    %cst_67 = arith.constant dense<0.000000e+00> : vector<16x64xf32>
    %58 = tpu.matmul %57, %54, %cst_67 {dimension_numbers = #tpu.dot_dimension_numbers<[1], [0], [0], [1], [0, 0, 1, 1], [], []>} : vector<16x128xf32>, vector<128x64xf32>, vector<16x64xf32> -> vector<16x64xf32>
    %c1_68 = arith.constant 1 : index
    %c0_69 = arith.constant 0 : index
    %59 = vector.load %arg13[%c1_68, %c0_69] : memref<18x128xf32, #tpu.memory_space<vmem>>, vector<16x128xf32>
    %cst_70 = arith.constant dense<0.000000e+00> : vector<16x64xf32>
    %60 = tpu.matmul %59, %56, %cst_70 {dimension_numbers = #tpu.dot_dimension_numbers<[1], [0], [0], [1], [0, 0, 1, 1], [], []>} : vector<16x128xf32>, vector<128x64xf32>, vector<16x64xf32> -> vector<16x64xf32>
    %61 = arith.addf %58, %60 : vector<16x64xf32>
    %c0_71 = arith.constant 0 : index
    %c0_72 = arith.constant 0 : index
    %62 = vector.load %arg9[%c0_71, %c0_72] : memref<1x64xf32, #tpu.memory_space<vmem>>, vector<1x64xf32>
    %63 = vector.broadcast %62 : vector<1x64xf32> to vector<16x64xf32>
    %64 = arith.mulf %61, %63 : vector<16x64xf32>
    %c0_73 = arith.constant 0 : index
    %c0_74 = arith.constant 0 : index
    %65 = vector.load %arg10[%c0_73, %c0_74] : memref<1x64xf32, #tpu.memory_space<vmem>>, vector<1x64xf32>
    %66 = vector.broadcast %65 : vector<1x64xf32> to vector<16x64xf32>
    %67 = arith.addf %64, %66 : vector<16x64xf32>
    %cst_75 = arith.constant 0.000000e+00 : f32
    %68 = vector.broadcast %cst_75 : f32 to vector<16x64xf32>
    %69 = arith.maximumf %67, %68 : vector<16x64xf32>
    %c0_76 = arith.constant 0 : index
    %c0_77 = arith.constant 0 : index
    %c0_78 = arith.constant 0 : index
    %c0_79 = arith.constant 0 : index
    %70 = vector.load %arg11[%c0_76, %c0_77, %c0_78, %c0_79] : memref<1x4x16x64xf32, #tpu.memory_space<vmem>>, vector<1x1x16x64xf32>
    %71 = vector.shape_cast %70 : vector<1x1x16x64xf32> to vector<16x64xf32>
    %72 = vector.shape_cast %69 : vector<16x64xf32> to vector<1x1x16x64xf32>
    tpu.vector_store %arg11[%c0_76, %c0_77, %c0_78, %c0_79], %72 {strides = array<i32>} : memref<1x4x16x64xf32, #tpu.memory_space<vmem>>, vector<1x1x16x64xf32>,
    %c1_80 = arith.constant 1 : index
    %c0_81 = arith.constant 0 : index
    %c0_82 = arith.constant 0 : index
    %c0_83 = arith.constant 0 : index
    %73 = vector.load %arg4[%c1_80, %c0_81, %c0_82, %c0_83] : memref<4x2x128x64xf32, #tpu.memory_space<vmem>>, vector<1x1x128x64xf32>
    %74 = vector.shape_cast %73 : vector<1x1x128x64xf32> to vector<128x64xf32>
    %c1_84 = arith.constant 1 : index
    %c1_85 = arith.constant 1 : index
    %c0_86 = arith.constant 0 : index
    %c0_87 = arith.constant 0 : index
    %75 = vector.load %arg4[%c1_84, %c1_85, %c0_86, %c0_87] : memref<4x2x128x64xf32, #tpu.memory_space<vmem>>, vector<1x1x128x64xf32>
    %76 = vector.shape_cast %75 : vector<1x1x128x64xf32> to vector<128x64xf32>
    %c0_88 = arith.constant 0 : index
    %c0_89 = arith.constant 0 : index
    %77 = vector.load %arg13[%c0_88, %c0_89] : memref<18x128xf32, #tpu.memory_space<vmem>>, vector<16x128xf32>
    %cst_90 = arith.constant dense<0.000000e+00> : vector<16x64xf32>
    %78 = tpu.matmul %77, %74, %cst_90 {dimension_numbers = #tpu.dot_dimension_numbers<[1], [0], [0], [1], [0, 0, 1, 1], [], []>} : vector<16x128xf32>, vector<128x64xf32>, vector<16x64xf32> -> vector<16x64xf32>
    %c1_91 = arith.constant 1 : index
    %c0_92 = arith.constant 0 : index
    %79 = vector.load %arg13[%c1_91, %c0_92] : memref<18x128xf32, #tpu.memory_space<vmem>>, vector<16x128xf32>
    %cst_93 = arith.constant dense<0.000000e+00> : vector<16x64xf32>
    %80 = tpu.matmul %79, %76, %cst_93 {dimension_numbers = #tpu.dot_dimension_numbers<[1], [0], [0], [1], [0, 0, 1, 1], [], []>} : vector<16x128xf32>, vector<128x64xf32>, vector<16x64xf32> -> vector<16x64xf32>
    %81 = arith.addf %78, %80 : vector<16x64xf32>
    %c0_94 = arith.constant 0 : index
    %c0_95 = arith.constant 0 : index
    %82 = vector.load %arg9[%c0_94, %c0_95] : memref<1x64xf32, #tpu.memory_space<vmem>>, vector<1x64xf32>
    %83 = vector.broadcast %82 : vector<1x64xf32> to vector<16x64xf32>
    %84 = arith.mulf %81, %83 : vector<16x64xf32>
    %c0_96 = arith.constant 0 : index
    %c0_97 = arith.constant 0 : index
    %85 = vector.load %arg10[%c0_96, %c0_97] : memref<1x64xf32, #tpu.memory_space<vmem>>, vector<1x64xf32>
    %86 = vector.broadcast %85 : vector<1x64xf32> to vector<16x64xf32>
    %87 = arith.addf %84, %86 : vector<16x64xf32>
    %cst_98 = arith.constant 0.000000e+00 : f32
    %88 = vector.broadcast %cst_98 : f32 to vector<16x64xf32>
    %89 = arith.maximumf %87, %88 : vector<16x64xf32>
    %c0_99 = arith.constant 0 : index
    %c1_100 = arith.constant 1 : index
    %c0_101 = arith.constant 0 : index
    %c0_102 = arith.constant 0 : index
    %90 = vector.load %arg11[%c0_99, %c1_100, %c0_101, %c0_102] : memref<1x4x16x64xf32, #tpu.memory_space<vmem>>, vector<1x1x16x64xf32>
    %91 = vector.shape_cast %90 : vector<1x1x16x64xf32> to vector<16x64xf32>
    %92 = vector.shape_cast %89 : vector<16x64xf32> to vector<1x1x16x64xf32>
    tpu.vector_store %arg11[%c0_99, %c1_100, %c0_101, %c0_102], %92 {strides = array<i32>} : memref<1x4x16x64xf32, #tpu.memory_space<vmem>>, vector<1x1x16x64xf32>,
    %c2_103 = arith.constant 2 : index
    %c0_104 = arith.constant 0 : index
    %c0_105 = arith.constant 0 : index
    %c0_106 = arith.constant 0 : index
    %93 = vector.load %arg4[%c2_103, %c0_104, %c0_105, %c0_106] : memref<4x2x128x64xf32, #tpu.memory_space<vmem>>, vector<1x1x128x64xf32>
    %94 = vector.shape_cast %93 : vector<1x1x128x64xf32> to vector<128x64xf32>
    %c2_107 = arith.constant 2 : index
    %c1_108 = arith.constant 1 : index
    %c0_109 = arith.constant 0 : index
    %c0_110 = arith.constant 0 : index
    %95 = vector.load %arg4[%c2_107, %c1_108, %c0_109, %c0_110] : memref<4x2x128x64xf32, #tpu.memory_space<vmem>>, vector<1x1x128x64xf32>
    %96 = vector.shape_cast %95 : vector<1x1x128x64xf32> to vector<128x64xf32>
    %c1_111 = arith.constant 1 : index
    %c0_112 = arith.constant 0 : index
    %97 = vector.load %arg13[%c1_111, %c0_112] : memref<18x128xf32, #tpu.memory_space<vmem>>, vector<16x128xf32>
    %cst_113 = arith.constant dense<0.000000e+00> : vector<16x64xf32>
    %98 = tpu.matmul %97, %94, %cst_113 {dimension_numbers = #tpu.dot_dimension_numbers<[1], [0], [0], [1], [0, 0, 1, 1], [], []>} : vector<16x128xf32>, vector<128x64xf32>, vector<16x64xf32> -> vector<16x64xf32>
    %c2_114 = arith.constant 2 : index
    %c0_115 = arith.constant 0 : index
    %99 = vector.load %arg13[%c2_114, %c0_115] : memref<18x128xf32, #tpu.memory_space<vmem>>, vector<16x128xf32>
    %cst_116 = arith.constant dense<0.000000e+00> : vector<16x64xf32>
    %100 = tpu.matmul %99, %96, %cst_116 {dimension_numbers = #tpu.dot_dimension_numbers<[1], [0], [0], [1], [0, 0, 1, 1], [], []>} : vector<16x128xf32>, vector<128x64xf32>, vector<16x64xf32> -> vector<16x64xf32>
    %101 = arith.addf %98, %100 : vector<16x64xf32>
    %c0_117 = arith.constant 0 : index
    %c0_118 = arith.constant 0 : index
    %102 = vector.load %arg9[%c0_117, %c0_118] : memref<1x64xf32, #tpu.memory_space<vmem>>, vector<1x64xf32>
    %103 = vector.broadcast %102 : vector<1x64xf32> to vector<16x64xf32>
    %104 = arith.mulf %101, %103 : vector<16x64xf32>
    %c0_119 = arith.constant 0 : index
    %c0_120 = arith.constant 0 : index
    %105 = vector.load %arg10[%c0_119, %c0_120] : memref<1x64xf32, #tpu.memory_space<vmem>>, vector<1x64xf32>
    %106 = vector.broadcast %105 : vector<1x64xf32> to vector<16x64xf32>
    %107 = arith.addf %104, %106 : vector<16x64xf32>
    %cst_121 = arith.constant 0.000000e+00 : f32
    %108 = vector.broadcast %cst_121 : f32 to vector<16x64xf32>
    %109 = arith.maximumf %107, %108 : vector<16x64xf32>
    %c0_122 = arith.constant 0 : index
    %c2_123 = arith.constant 2 : index
    %c0_124 = arith.constant 0 : index
    %c0_125 = arith.constant 0 : index
    %110 = vector.load %arg11[%c0_122, %c2_123, %c0_124, %c0_125] : memref<1x4x16x64xf32, #tpu.memory_space<vmem>>, vector<1x1x16x64xf32>
    %111 = vector.shape_cast %110 : vector<1x1x16x64xf32> to vector<16x64xf32>
    %112 = vector.shape_cast %109 : vector<16x64xf32> to vector<1x1x16x64xf32>
    tpu.vector_store %arg11[%c0_122, %c2_123, %c0_124, %c0_125], %112 {strides = array<i32>} : memref<1x4x16x64xf32, #tpu.memory_space<vmem>>, vector<1x1x16x64xf32>,
    %c3 = arith.constant 3 : index
    %c0_126 = arith.constant 0 : index
    %c0_127 = arith.constant 0 : index
    %c0_128 = arith.constant 0 : index
    %113 = vector.load %arg4[%c3, %c0_126, %c0_127, %c0_128] : memref<4x2x128x64xf32, #tpu.memory_space<vmem>>, vector<1x1x128x64xf32>
    %114 = vector.shape_cast %113 : vector<1x1x128x64xf32> to vector<128x64xf32>
    %c3_129 = arith.constant 3 : index
    %c1_130 = arith.constant 1 : index
    %c0_131 = arith.constant 0 : index
    %c0_132 = arith.constant 0 : index
    %115 = vector.load %arg4[%c3_129, %c1_130, %c0_131, %c0_132] : memref<4x2x128x64xf32, #tpu.memory_space<vmem>>, vector<1x1x128x64xf32>
    %116 = vector.shape_cast %115 : vector<1x1x128x64xf32> to vector<128x64xf32>
    %c1_133 = arith.constant 1 : index
    %c0_134 = arith.constant 0 : index
    %117 = vector.load %arg13[%c1_133, %c0_134] : memref<18x128xf32, #tpu.memory_space<vmem>>, vector<16x128xf32>
    %cst_135 = arith.constant dense<0.000000e+00> : vector<16x64xf32>
    %118 = tpu.matmul %117, %114, %cst_135 {dimension_numbers = #tpu.dot_dimension_numbers<[1], [0], [0], [1], [0, 0, 1, 1], [], []>} : vector<16x128xf32>, vector<128x64xf32>, vector<16x64xf32> -> vector<16x64xf32>
    %c2_136 = arith.constant 2 : index
    %c0_137 = arith.constant 0 : index
    %119 = vector.load %arg13[%c2_136, %c0_137] : memref<18x128xf32, #tpu.memory_space<vmem>>, vector<16x128xf32>
    %cst_138 = arith.constant dense<0.000000e+00> : vector<16x64xf32>
    %120 = tpu.matmul %119, %116, %cst_138 {dimension_numbers = #tpu.dot_dimension_numbers<[1], [0], [0], [1], [0, 0, 1, 1], [], []>} : vector<16x128xf32>, vector<128x64xf32>, vector<16x64xf32> -> vector<16x64xf32>
    %121 = arith.addf %118, %120 : vector<16x64xf32>
    %c0_139 = arith.constant 0 : index
    %c0_140 = arith.constant 0 : index
    %122 = vector.load %arg9[%c0_139, %c0_140] : memref<1x64xf32, #tpu.memory_space<vmem>>, vector<1x64xf32>
    %123 = vector.broadcast %122 : vector<1x64xf32> to vector<16x64xf32>
    %124 = arith.mulf %121, %123 : vector<16x64xf32>
    %c0_141 = arith.constant 0 : index
    %c0_142 = arith.constant 0 : index
    %125 = vector.load %arg10[%c0_141, %c0_142] : memref<1x64xf32, #tpu.memory_space<vmem>>, vector<1x64xf32>
    %126 = vector.broadcast %125 : vector<1x64xf32> to vector<16x64xf32>
    %127 = arith.addf %124, %126 : vector<16x64xf32>
    %cst_143 = arith.constant 0.000000e+00 : f32
    %128 = vector.broadcast %cst_143 : f32 to vector<16x64xf32>
    %129 = arith.maximumf %127, %128 : vector<16x64xf32>
    %c0_144 = arith.constant 0 : index
    %c3_145 = arith.constant 3 : index
    %c0_146 = arith.constant 0 : index
    %c0_147 = arith.constant 0 : index
    %130 = vector.load %arg11[%c0_144, %c3_145, %c0_146, %c0_147] : memref<1x4x16x64xf32, #tpu.memory_space<vmem>>, vector<1x1x16x64xf32>
    %131 = vector.shape_cast %130 : vector<1x1x16x64xf32> to vector<16x64xf32>
    %132 = vector.shape_cast %129 : vector<16x64xf32> to vector<1x1x16x64xf32>
    tpu.vector_store %arg11[%c0_144, %c3_145, %c0_146, %c0_147], %132 {strides = array<i32>} : memref<1x4x16x64xf32, #tpu.memory_space<vmem>>, vector<1x1x16x64xf32>,
    return
  }
  func.func @transform_0(%arg0: i32) -> (i32, i32, i32) {
    %c0_i32 = arith.constant 0 : i32
    %c0_i32_0 = arith.constant 0 : i32
    %c0_i32_1 = arith.constant 0 : i32
    return %arg0, %c0_i32, %c0_i32_0 : i32, i32, i32
  }
  func.func @transform_1(%arg0: i32) -> (i32, i32, i32) {
    %c0_i32 = arith.constant 0 : i32
    %c0_i32_0 = arith.constant 0 : i32
    %c0_i32_1 = arith.constant 0 : i32
    %c0_i32_2 = arith.constant 0 : i32
    return %c0_i32, %c0_i32_0, %c0_i32_1 : i32, i32, i32
  }
  func.func @transform_2(%arg0: i32) -> (i32, i32, i32) {
    %c0_i32 = arith.constant 0 : i32
    %c0_i32_0 = arith.constant 0 : i32
    %c0_i32_1 = arith.constant 0 : i32
    %c0_i32_2 = arith.constant 0 : i32
    return %c0_i32, %c0_i32_0, %c0_i32_1 : i32, i32, i32
  }
  func.func @transform_3(%arg0: i32) -> (i32, i32, i32, i32) {
    %c0_i32 = arith.constant 0 : i32
    %c0_i32_0 = arith.constant 0 : i32
    %c0_i32_1 = arith.constant 0 : i32
    %c0_i32_2 = arith.constant 0 : i32
    %c0_i32_3 = arith.constant 0 : i32
    return %c0_i32, %c0_i32_0, %c0_i32_1, %c0_i32_2 : i32, i32, i32, i32
  }
  func.func @transform_4(%arg0: i32) -> (i32, i32) {
    %c0_i32 = arith.constant 0 : i32
    %c0_i32_0 = arith.constant 0 : i32
    %c0_i32_1 = arith.constant 0 : i32
    return %c0_i32, %c0_i32_0 : i32, i32
  }
  func.func @transform_5(%arg0: i32) -> (i32, i32) {
    %c0_i32 = arith.constant 0 : i32
    %c0_i32_0 = arith.constant 0 : i32
    %c0_i32_1 = arith.constant 0 : i32
    return %c0_i32, %c0_i32_0 : i32, i32
  }
  func.func @transform_6(%arg0: i32) -> (i32, i32) {
    %c0_i32 = arith.constant 0 : i32
    %c0_i32_0 = arith.constant 0 : i32
    %c0_i32_1 = arith.constant 0 : i32
    return %c0_i32, %c0_i32_0 : i32, i32
  }
  func.func @transform_7(%arg0: i32) -> (i32, i32) {
    %c0_i32 = arith.constant 0 : i32
    %c0_i32_0 = arith.constant 0 : i32
    %c0_i32_1 = arith.constant 0 : i32
    return %c0_i32, %c0_i32_0 : i32, i32
  }
  func.func @transform_8(%arg0: i32) -> (i32, i32) {
    %c0_i32 = arith.constant 0 : i32
    %c0_i32_0 = arith.constant 0 : i32
    %c0_i32_1 = arith.constant 0 : i32
    return %c0_i32, %c0_i32_0 : i32, i32
  }
  func.func @transform_9(%arg0: i32) -> (i32, i32) {
    %c0_i32 = arith.constant 0 : i32
    %c0_i32_0 = arith.constant 0 : i32
    %c0_i32_1 = arith.constant 0 : i32
    return %c0_i32, %c0_i32_0 : i32, i32
  }
  func.func @transform_10(%arg0: i32) -> (i32, i32, i32, i32) {
    %c0_i32 = arith.constant 0 : i32
    %c0_i32_0 = arith.constant 0 : i32
    %c0_i32_1 = arith.constant 0 : i32
    %c0_i32_2 = arith.constant 0 : i32
    return %arg0, %c0_i32, %c0_i32_0, %c0_i32_1 : i32, i32, i32, i32
  }
}

</mosaic_0001>

<bundles_post_ra>
// kernel: tile.33
= control target key start
LH: loop header
LB: loop body
LE: loop exit
PB: predicated region body
PF: predicated region fallthrough
CT: control target
= control target key end

     0   :  { %s28_s0 = inlined_call_operand.vmem [shape: f32[8], index: 0, kind: input, shape index: {}]   ;;  %s29_s1 = inlined_call_operand.vmem [shape: f32[16,8], index: 1, kind: output, shape index: {}]  }
   0x1   :  { %v4_v0 = vld [vmem:[%s28_s0] ss:$0 sm:$0xff] }
   0x2   :  { %5 = vst [vmem:[%s29_s1] sm:$0xff] %v4_v0  ;;  %8 = vst [vmem:[%s29_s1 + $0x8] sm:$0xff] %v4_v0 }

// kernel: tile.34
= control target key start
LH: loop header
LB: loop body
LE: loop exit
PB: predicated region body
PF: predicated region fallthrough
CT: control target
= control target key end

     0   :  { %s131_s10 = smov 120   ;;  %s132_s11 = smov 104   ;;  %vm3_vm0 = vcmask 64512   ;;  %vm9_vm1 = vcmask 1048512   ;;  %vm15_vm2 = vcmask 982912   ;;  %vm21_vm3 = vcmask 917312   ;;  %s207_s0 = inlined_call_operand.vmem [shape: f32[16,8], index: 0, kind: input, shape index: {}]   ;;  %s208_s1 = inlined_call_operand.vmem [shape: f32[1,128], index: 1, kind: output, shape index: {}]  }
   0x1   :  { %v101_v0 = vld [vmem:[%s207_s0 + $0xf] sm:$0x1]   ;;  %v103_v1 = vld [vmem:[%s207_s0 + $0xd] sm:$0x1]   ;;  %v102_v2 = vld [vmem:[%s207_s0 + $0xe] sm:$0x1]  }
   0x2   :  { %7 = vrot.lane.b32.xlu0 %v101_v0, %s131_s10  ;;  %19 = vrot.lane.b32.xlu1 %v103_v1, %s132_s11  ;;  %v104_v3 = vld [vmem:[%s207_s0 + $0xc] sm:$0x1]   ;;  %s133_s16 = smov 112   ;;  %s134_s17 = smov 96   ;;  %v105_v4 = vld [vmem:[%s207_s0 + $0xb] sm:$0x1]  }
   0x3   :  { %v106_v5 = vld [vmem:[%s207_s0 + $0xa] sm:$0x1]   ;;  %v2_v6 = vld [vmem:[%s207_s0] sm:$0x1]   ;;  %s135_s24 = smov 88   ;;  %s136_s25 = smov 80  }
   0x4   :  { %4 = vst.msk [vmem:[#allocation0] sm:$0x1] %vm3_vm0, %v2_v6   ;;  %v107_v7 = vld [vmem:[%s207_s0 + $0x9] sm:$0x1]   ;;  %v108_v8 = vld [vmem:[%s207_s0 + $0x8] sm:$0x1]  }
   0x5   :  { %s137_s30 = smov 72   ;;  %s138_s2 = smov 64   ;;  %v109_v9 = vld [vmem:[%s207_s0 + $0x7] sm:$0x1]   ;;  %v110_v10 = vld [vmem:[%s207_s0 + $0x6] sm:$0x1]  }
   0x6   :  { %13 = vrot.lane.b32.xlu0 %v102_v2, %s133_s16  ;;  %25 = vrot.lane.b32.xlu1 %v104_v3, %s134_s17  ;;  %s139_s7 = smov 56   ;;  %s140_s8 = smov 48   ;;  %v111_v11 = vld [vmem:[%s207_s0 + $0x5] sm:$0x1]   ;;  %v112_v12 = vld [vmem:[%s207_s0 + $0x4] sm:$0x1]  }
   0x7   :  { %s141_s13 = smov 40   ;;  %s142_s14 = smov 32   ;;  %v113_v13 = vld [vmem:[%s207_s0 + $0x3] sm:$0x1]   ;;  %v114_v14 = vld [vmem:[%s207_s0 + $0x2] sm:$0x1]  }
   0x8   :  { %s143_s19 = smov 24   ;;  %s144_s20 = smov 16   ;;  %v115_v15 = vld [vmem:[%s207_s0 + $0x1] sm:$0x1]   ;;  %vm27_vm4 = vcmask 851712   ;;  %vm33_vm5 = vcmask 786112  }
   0x9   :  { %s145_s0 = smov 8   ;;  %vm39_vm6 = vcmask 720512   ;;  %vm45_vm7 = vcmask 654912   ;;  %vm51_vm8 = vcmask 589312   ;;  %vm57_vm9 = vcmask 523712  }
   0xa   :  { %31 = vrot.lane.b32.xlu0 %v105_v4, %s135_s24  ;;  %37 = vrot.lane.b32.xlu1 %v106_v5, %s136_s25  ;;  %vm63_vm10 = vcmask 458112   ;;  %vm69_vm11 = vcmask 392512   ;;  %vm75_vm12 = vcmask 326912   ;;  %vm81_vm13 = vcmask 261312  }
   0xb   :  { %vm87_vm14 = vcmask 195712   ;;  %vm93_vm15 = vcmask 130112  }
   0xe   :  { %43 = vrot.lane.b32.xlu0 %v107_v7, %s137_s30  ;;  %49 = vrot.lane.b32.xlu1 %v108_v8, %s138_s2 }
  0x12   :  { %55 = vrot.lane.b32.xlu0 %v109_v9, %s139_s7  ;;  %61 = vrot.lane.b32.xlu1 %v110_v10, %s140_s8 }
  0x16   :  { %67 = vrot.lane.b32.xlu0 %v111_v11, %s141_s13  ;;  %73 = vrot.lane.b32.xlu1 %v112_v12, %s142_s14 }
  0x1a   :  { %79 = vrot.lane.b32.xlu0 %v113_v13, %s143_s19  ;;  %85 = vrot.lane.b32.xlu1 %v114_v14, %s144_s20 }
  0x1e   :  { %91 = vrot.lane.b32.xlu0 %v115_v15, %s145_s0 }
  0x74   :  { %v8_v16 = vpop.permute.xlu0 %7   ;;  %v20_v17 = vpop.permute.xlu1 %19  }
  0x75   :  { %10 = vst.msk [vmem:[#allocation0] sm:$0x1] %vm9_vm1, %v8_v16  }
  0x78   :  { %v14_v18 = vpop.permute.xlu0 %13   ;;  %v26_v19 = vpop.permute.xlu1 %25  }
  0x79   :  { %16 = vst.msk [vmem:[#allocation0] sm:$0x1] %vm15_vm2, %v14_v18  }
  0x7a   :  { %22 = vst.msk [vmem:[#allocation0] sm:$0x1] %vm21_vm3, %v20_v17  }
  0x7b   :  { %28 = vst.msk [vmem:[#allocation0] sm:$0x1] %vm27_vm4, %v26_v19  }
  0x7c   :  { %v32_v20 = vpop.permute.xlu0 %31   ;;  %v38_v21 = vpop.permute.xlu1 %37  }
  0x7d   :  { %34 = vst.msk [vmem:[#allocation0] sm:$0x1] %vm33_vm5, %v32_v20  }
  0x7e   :  { %40 = vst.msk [vmem:[#allocation0] sm:$0x1] %vm39_vm6, %v38_v21  }
  0x80   :  { %v44_v22 = vpop.permute.xlu0 %43   ;;  %v50_v23 = vpop.permute.xlu1 %49  }
  0x81   :  { %46 = vst.msk [vmem:[#allocation0] sm:$0x1] %vm45_vm7, %v44_v22  }
  0x82   :  { %52 = vst.msk [vmem:[#allocation0] sm:$0x1] %vm51_vm8, %v50_v23  }
  0x84   :  { %v56_v24 = vpop.permute.xlu0 %55   ;;  %v62_v25 = vpop.permute.xlu1 %61  }
  0x85   :  { %58 = vst.msk [vmem:[#allocation0] sm:$0x1] %vm57_vm9, %v56_v24  }
  0x86   :  { %64 = vst.msk [vmem:[#allocation0] sm:$0x1] %vm63_vm10, %v62_v25  }
  0x88   :  { %v68_v26 = vpop.permute.xlu0 %67   ;;  %v74_v27 = vpop.permute.xlu1 %73  }
  0x89   :  { %70 = vst.msk [vmem:[#allocation0] sm:$0x1] %vm69_vm11, %v68_v26  }
  0x8a   :  { %76 = vst.msk [vmem:[#allocation0] sm:$0x1] %vm75_vm12, %v74_v27  }
  0x8c   :  { %v80_v28 = vpop.permute.xlu0 %79   ;;  %v86_v29 = vpop.permute.xlu1 %85  }
  0x8d   :  { %82 = vst.msk [vmem:[#allocation0] sm:$0x1] %vm81_vm13, %v80_v28  }
  0x8e   :  { %88 = vst.msk [vmem:[#allocation0] sm:$0x1] %vm87_vm14, %v86_v29  }
  0x90   :  { %v92_v30 = vpop.permute.xlu0 %91  }
  0x91   :  { %94 = vst.msk [vmem:[#allocation0] sm:$0x1] %vm93_vm15, %v92_v30  }
  0x98   :  { %v98_v31 = vld [vmem:[#allocation0] sm:$0x1] }
  0x99   :  { %100 = vst [vmem:[%s208_s1] sm:$0x1] %v98_v31 }

// kernel: tile.53
= control target key start
LH: loop header
LB: loop body
LE: loop exit
PB: predicated region body
PF: predicated region fallthrough
CT: control target
= control target key end

     0   :  { %s28_s0 = inlined_call_operand.vmem [shape: f32[4], index: 0, kind: input, shape index: {}]   ;;  %s29_s1 = inlined_call_operand.vmem [shape: f32[16,4], index: 1, kind: output, shape index: {}]  }
   0x1   :  { %v4_v0 = vld [vmem:[%s28_s0] ss:$0 sm:$0xff] }
   0x2   :  { %5 = vst [vmem:[%s29_s1] sm:$0xff] %v4_v0  ;;  %8 = vst [vmem:[%s29_s1 + $0x8] sm:$0xff] %v4_v0 }

// kernel: tile.54
= control target key start
LH: loop header
LB: loop body
LE: loop exit
PB: predicated region body
PF: predicated region fallthrough
CT: control target
= control target key end

     0   :  { %s131_s10 = smov 60   ;;  %s132_s11 = smov 52   ;;  %vm3_vm0 = vcmask 31744   ;;  %vm9_vm1 = vcmask 523744   ;;  %vm15_vm2 = vcmask 490944   ;;  %vm21_vm3 = vcmask 458144   ;;  %s207_s0 = inlined_call_operand.vmem [shape: f32[16,4], index: 0, kind: input, shape index: {}]   ;;  %s208_s1 = inlined_call_operand.vmem [shape: f32[1,64], index: 1, kind: output, shape index: {}]  }
   0x1   :  { %v101_v0 = vld [vmem:[%s207_s0 + $0xf] sm:$0x1]   ;;  %v103_v1 = vld [vmem:[%s207_s0 + $0xd] sm:$0x1]   ;;  %v102_v2 = vld [vmem:[%s207_s0 + $0xe] sm:$0x1]  }
   0x2   :  { %7 = vrot.lane.b32.xlu0 %v101_v0, %s131_s10  ;;  %19 = vrot.lane.b32.xlu1 %v103_v1, %s132_s11  ;;  %v104_v3 = vld [vmem:[%s207_s0 + $0xc] sm:$0x1]   ;;  %s133_s16 = smov 56   ;;  %s134_s17 = smov 48   ;;  %v105_v4 = vld [vmem:[%s207_s0 + $0xb] sm:$0x1]  }
   0x3   :  { %v106_v5 = vld [vmem:[%s207_s0 + $0xa] sm:$0x1]   ;;  %v2_v6 = vld [vmem:[%s207_s0] sm:$0x1]   ;;  %s135_s24 = smov 44   ;;  %s136_s25 = smov 40  }
   0x4   :  { %4 = vst.msk [vmem:[#allocation0] sm:$0x1] %vm3_vm0, %v2_v6   ;;  %v107_v7 = vld [vmem:[%s207_s0 + $0x9] sm:$0x1]   ;;  %v108_v8 = vld [vmem:[%s207_s0 + $0x8] sm:$0x1]  }
   0x5   :  { %s137_s30 = smov 36   ;;  %s138_s2 = smov 32   ;;  %v109_v9 = vld [vmem:[%s207_s0 + $0x7] sm:$0x1]   ;;  %v110_v10 = vld [vmem:[%s207_s0 + $0x6] sm:$0x1]  }
   0x6   :  { %13 = vrot.lane.b32.xlu0 %v102_v2, %s133_s16  ;;  %25 = vrot.lane.b32.xlu1 %v104_v3, %s134_s17  ;;  %s139_s7 = smov 28   ;;  %s140_s8 = smov 24   ;;  %v111_v11 = vld [vmem:[%s207_s0 + $0x5] sm:$0x1]   ;;  %v112_v12 = vld [vmem:[%s207_s0 + $0x4] sm:$0x1]  }
   0x7   :  { %s141_s13 = smov 20   ;;  %s142_s14 = smov 16   ;;  %v113_v13 = vld [vmem:[%s207_s0 + $0x3] sm:$0x1]   ;;  %v114_v14 = vld [vmem:[%s207_s0 + $0x2] sm:$0x1]  }
   0x8   :  { %s143_s19 = smov 12   ;;  %s144_s20 = smov 8   ;;  %v115_v15 = vld [vmem:[%s207_s0 + $0x1] sm:$0x1]   ;;  %vm27_vm4 = vcmask 425344   ;;  %vm33_vm5 = vcmask 392544  }
   0x9   :  { %s145_s0 = smov 4   ;;  %vm39_vm6 = vcmask 359744   ;;  %vm45_vm7 = vcmask 326944   ;;  %vm51_vm8 = vcmask 294144   ;;  %vm57_vm9 = vcmask 261344  }
   0xa   :  { %31 = vrot.lane.b32.xlu0 %v105_v4, %s135_s24  ;;  %37 = vrot.lane.b32.xlu1 %v106_v5, %s136_s25  ;;  %vm63_vm10 = vcmask 228544   ;;  %vm69_vm11 = vcmask 195744   ;;  %vm75_vm12 = vcmask 162944   ;;  %vm81_vm13 = vcmask 130144  }
   0xb   :  { %vm87_vm14 = vcmask 97344   ;;  %vm93_vm15 = vcmask 64544  }
   0xe   :  { %43 = vrot.lane.b32.xlu0 %v107_v7, %s137_s30  ;;  %49 = vrot.lane.b32.xlu1 %v108_v8, %s138_s2 }
  0x12   :  { %55 = vrot.lane.b32.xlu0 %v109_v9, %s139_s7  ;;  %61 = vrot.lane.b32.xlu1 %v110_v10, %s140_s8 }
  0x16   :  { %67 = vrot.lane.b32.xlu0 %v111_v11, %s141_s13  ;;  %73 = vrot.lane.b32.xlu1 %v112_v12, %s142_s14 }
  0x1a   :  { %79 = vrot.lane.b32.xlu0 %v113_v13, %s143_s19  ;;  %85 = vrot.lane.b32.xlu1 %v114_v14, %s144_s20 }
  0x1e   :  { %91 = vrot.lane.b32.xlu0 %v115_v15, %s145_s0 }
  0x74   :  { %v8_v16 = vpop.permute.xlu0 %7   ;;  %v20_v17 = vpop.permute.xlu1 %19  }
  0x75   :  { %10 = vst.msk [vmem:[#allocation0] sm:$0x1] %vm9_vm1, %v8_v16  }
  0x78   :  { %v14_v18 = vpop.permute.xlu0 %13   ;;  %v26_v19 = vpop.permute.xlu1 %25  }
  0x79   :  { %16 = vst.msk [vmem:[#allocation0] sm:$0x1] %vm15_vm2, %v14_v18  }
  0x7a   :  { %22 = vst.msk [vmem:[#allocation0] sm:$0x1] %vm21_vm3, %v20_v17  }
  0x7b   :  { %28 = vst.msk [vmem:[#allocation0] sm:$0x1] %vm27_vm4, %v26_v19  }
  0x7c   :  { %v32_v20 = vpop.permute.xlu0 %31   ;;  %v38_v21 = vpop.permute.xlu1 %37  }
  0x7d   :  { %34 = vst.msk [vmem:[#allocation0] sm:$0x1] %vm33_vm5, %v32_v20  }
  0x7e   :  { %40 = vst.msk [vmem:[#allocation0] sm:$0x1] %vm39_vm6, %v38_v21  }
  0x80   :  { %v44_v22 = vpop.permute.xlu0 %43   ;;  %v50_v23 = vpop.permute.xlu1 %49  }
  0x81   :  { %46 = vst.msk [vmem:[#allocation0] sm:$0x1] %vm45_vm7, %v44_v22  }
  0x82   :  { %52 = vst.msk [vmem:[#allocation0] sm:$0x1] %vm51_vm8, %v50_v23  }
  0x84   :  { %v56_v24 = vpop.permute.xlu0 %55   ;;  %v62_v25 = vpop.permute.xlu1 %61  }
  0x85   :  { %58 = vst.msk [vmem:[#allocation0] sm:$0x1] %vm57_vm9, %v56_v24  }
  0x86   :  { %64 = vst.msk [vmem:[#allocation0] sm:$0x1] %vm63_vm10, %v62_v25  }
  0x88   :  { %v68_v26 = vpop.permute.xlu0 %67   ;;  %v74_v27 = vpop.permute.xlu1 %73  }
  0x89   :  { %70 = vst.msk [vmem:[#allocation0] sm:$0x1] %vm69_vm11, %v68_v26  }
  0x8a   :  { %76 = vst.msk [vmem:[#allocation0] sm:$0x1] %vm75_vm12, %v74_v27  }
  0x8c   :  { %v80_v28 = vpop.permute.xlu0 %79   ;;  %v86_v29 = vpop.permute.xlu1 %85  }
  0x8d   :  { %82 = vst.msk [vmem:[#allocation0] sm:$0x1] %vm81_vm13, %v80_v28  }
  0x8e   :  { %88 = vst.msk [vmem:[#allocation0] sm:$0x1] %vm87_vm14, %v86_v29  }
  0x90   :  { %v92_v30 = vpop.permute.xlu0 %91  }
  0x91   :  { %94 = vst.msk [vmem:[#allocation0] sm:$0x1] %vm93_vm15, %v92_v30  }
  0x98   :  { %v98_v31 = vld [vmem:[#allocation0] sm:$0x1] }
  0x99   :  { %100 = vst [vmem:[%s208_s1] sm:$0x1] %v98_v31 }

// kernel: centerblock_forward.1
= control target key start
LH: loop header
LB: loop body
LE: loop exit
PB: predicated region body
PF: predicated region fallthrough
CT: control target
= control target key end

     0   :  { %s3229_s13 = smov 0   ;;  %s3906_s0 = inlined_call_operand.vmem [shape: f32[2,16,64], index: 0, kind: input, shape index: {}]   ;;  %s3907_s1 = inlined_call_operand.vmem [shape: f32[3,64,128], index: 1, kind: input, shape index: {}]   ;;  %s3908_s2 = inlined_call_operand.vmem [shape: f32[3,128,128], index: 2, kind: input, shape index: {}]   ;;  %s3909_s3 = inlined_call_operand.vmem [shape: f32[4,2,128,64], index: 3, kind: input, shape index: {}]   ;;  %s3910_s4 = inlined_call_operand.vmem [shape: f32[1,128], index: 4, kind: input, shape index: {}]   ;;  %s3911_s5 = inlined_call_operand.vmem [shape: f32[1,128], index: 5, kind: input, shape index: {}]   ;;  %s3912_s6 = inlined_call_operand.vmem [shape: f32[1,128], index: 6, kind: input, shape index: {}]   ;;  %s3913_s7 = inlined_call_operand.vmem [shape: f32[1,128], index: 7, kind: input, shape index: {}]   ;;  %s3914_s8 = inlined_call_operand.vmem [shape: f32[1,64], index: 8, kind: input, shape index: {}]   ;;  %s3915_s9 = inlined_call_operand.vmem [shape: f32[1,64], index: 9, kind: input, shape index: {}]   ;;  %s3916_s10 = inlined_call_operand.vmem [shape: f32[2,4,16,64], index: 10, kind: output, shape index: {}]  }
   0x1 LB: > { %s1873_s14 = sadd.s32 4294967295, %s3171_s13   ;;  %p1877_p0 = scmp.ge.s32.totalorder %s3171_s13, 1  ;;  %s3171_s13 = sphi %s3229_s13, %s20_s13  }
   0x2   : > { %p312_p1 = scmp.lt.s32.totalorder %s3171_s13, 3 }
   0x4   : > { %p313_p2 = pnand %p1877_p0, %p312_p1 }
   0x5   : > { %v1882_v0 = vld [vmem:[%s3907_s1 + $0x40] sm:$0xff] (!%p313_p2)  ;;  %v1883_v1 = vld [vmem:[%s3907_s1 + $0x48] sm:$0xff] (!%p313_p2)  ;;  %v1884_v2 = vld [vmem:[%s3907_s1 + $0x50] sm:$0xff] (!%p313_p2)  ;;  %p3246_p3 = scmp.lt.s32.totalorder (!%p313_p2), %s1873_s14, 1  ;;  %vm360_vm0 = vcmask (!%p313_p2), 523264   ;;  %v3173_v5 = vmov (!%p313_p2), 0.0  }
   0x6   : > { %316 = sbr.rel (%p313_p2) target bundleno = 857 (0x359), region = 60  ;;  %v2740_v3 = vpack.c.bf16 (!%p313_p2), %v1883_v1, %v1882_v0  ;;  %v1885_v4 = vld [vmem:[%s3907_s1 + $0x58] sm:$0xff] (!%p313_p2)  ;;  %361 = vst.msk [vmem:[#allocation2] sm:$0xff] (!%p313_p2), %vm360_vm0, %v3173_v5  ;;  %362 = vst.msk [vmem:[#allocation2 + $0x8] sm:$0xff] (!%p313_p2), %vm360_vm0, %v3173_v5  ;;  %vm363_vm1 = vcmask (!%p313_p2), 517120   ;;  %v1886_v7 = vld [vmem:[%s3907_s1 + $0x60] sm:$0xff] (!%p313_p2) }
   0x7   : > { %666 = vst [vmem:[#allocation3] sm:$0xff] (!%p313_p2), %v3173_v5  ;;  %667 = vst [vmem:[#allocation3 + $0x8] sm:$0xff] (!%p313_p2), %v3173_v5  ;;  %v2744_v6 = vpack.c.bf16 (!%p313_p2), %v1885_v4, %v1884_v2  ;;  %v1887_v8 = vld [vmem:[%s3907_s1 + $0x68] sm:$0xff] (!%p313_p2)  ;;  %v1888_v10 = vld [vmem:[%s3907_s1 + $0x70] sm:$0xff] (!%p313_p2) }
   0x8   : > { %668 = vst [vmem:[#allocation3 + $0x10] sm:$0x3] (!%p313_p2), %v3173_v5  ;;  %364 = vst.msk [vmem:[#allocation2 + $0x10] sm:$0x3] (!%p313_p2), %vm363_vm1, %v3173_v5  ;;  %2741 = vmatprep.subr.bf16.mxu0 (!%p313_p2), %v2740_v3  ;;  %v2748_v9 = vpack.c.bf16 (!%p313_p2), %v1887_v8, %v1886_v7  ;;  %v1889_v11 = vld [vmem:[%s3907_s1 + $0x78] sm:$0xff] (!%p313_p2)  ;;  %v671_v14 = vld [vmem:[%s3908_s2] sm:$0xff] (!%p313_p2) }
   0x9   : > { %2743 = vmatpush3.bf16.msra.mxu0 (!%p313_p2), %v2740_v3  ;;  %v2752_v15 = vpack.c.bf16 (!%p313_p2), %v1889_v11, %v1888_v10  ;;  %v369_v16 = vld [vmem:[%s3907_s1] sm:$0xff] (!%p313_p2)  ;;  %v672_v17 = vld [vmem:[%s3908_s2 + $0x8] sm:$0xff] (!%p313_p2)  ;;  %v673_v20 = vld [vmem:[%s3908_s2 + $0x10] sm:$0xff] (!%p313_p2) }
   0xa   : > { %2745 = vmatprep.subr.bf16.mxu0 (!%p313_p2), %v2744_v6  ;;  %v370_v18 = vld [vmem:[%s3907_s1 + $0x8] sm:$0xff] (!%p313_p2)  ;;  %v2820_v19 = vpack.c.bf16 (!%p313_p2), %v672_v17, %v671_v14  ;;  %v674_v21 = vld [vmem:[%s3908_s2 + $0x18] sm:$0xff] (!%p313_p2)  ;;  %v675_v23 = vld [vmem:[%s3908_s2 + $0x20] sm:$0xff] (!%p313_p2) }
   0xb   : > { %v2824_v22 = vpack.c.bf16 (!%p313_p2), %v674_v21, %v673_v20  ;;  %v676_v24 = vld [vmem:[%s3908_s2 + $0x28] sm:$0xff] (!%p313_p2)  ;;  %v2756_v25 = vpack.c.bf16 (!%p313_p2), %v370_v18, %v369_v16  ;;  %v371_v27 = vld [vmem:[%s3907_s1 + $0x10] sm:$0xff] (!%p313_p2)  ;;  %v372_v28 = vld [vmem:[%s3907_s1 + $0x18] sm:$0xff] (!%p313_p2) }
   0xc   : > { %2821 = vmatprep.subr.bf16.mxu1 (!%p313_p2), %v2820_v19  ;;  %v2828_v29 = vpack.c.bf16 (!%p313_p2), %v676_v24, %v675_v23  ;;  %v677_v30 = vld [vmem:[%s3908_s2 + $0x30] sm:$0xff] (!%p313_p2)  ;;  %v678_v31 = vld [vmem:[%s3908_s2 + $0x38] sm:$0xff] (!%p313_p2)  ;;  %v2760_v33 = vpack.c.bf16 (!%p313_p2), %v372_v28, %v371_v27  ;;  %v373_v35 = vld [vmem:[%s3907_s1 + $0x20] sm:$0xff] (!%p313_p2) }
   0xd   : > { %s3919_s14 = smov (!%p3246_p3, %s1873_s14), 1  ;;  %2747 = vmatpush3.bf16.msra.mxu0 %v2744_v6  ;;  %2823 = vmatpush3.bf16.msra.mxu1 %v2820_v19  ;;  %v374_v36 = vld [vmem:[%s3907_s1 + $0x28] sm:$0xff]  ;;  %v2832_v37 = vpack.c.bf16 %v678_v31, %v677_v30  ;;  %v375_v39 = vld [vmem:[%s3907_s1 + $0x30] sm:$0xff]  ;;  %v376_v40 = vld [vmem:[%s3907_s1 + $0x38] sm:$0xff] }
   0xe   : > { %s2068_s28 = sshll.u32 %s3919_s14, 4  ;;  %2749 = vmatprep.subr.bf16.mxu0 %v2748_v9  ;;  %2825 = vmatprep.subr.bf16.mxu1 %v2824_v22  ;;  %v2764_v38 = vpack.c.bf16 %v374_v36, %v373_v35  ;;  %v2768_v41 = vpack.c.bf16 %v376_v40, %v375_v39  ;;  %v1890_v42 = vld [vmem:[%s3907_s1 + $0x80] sm:$0xff]  ;;  %v1891_v43 = vld [vmem:[%s3907_s1 + $0x88] sm:$0xff]  ;;  %v1892_v45 = vld [vmem:[%s3907_s1 + $0x90] sm:$0xff]  ;;  %s2069_s18 = sshll.u32 %s3919_s14, 6 }
   0xf   : > { %s354_s15 = scalar_lea.vmem %s3906_s0, %s2068_s28  ;;  %v2772_v44 = vpack.c.bf16 %v1891_v43, %v1890_v42  ;;  %v1893_v46 = vld [vmem:[%s3907_s1 + $0x98] sm:$0xff]  ;;  %v1894_v50 = vld [vmem:[%s3907_s1 + $0xa0] sm:$0xff]  ;;  %v1895_v51 = vld [vmem:[%s3907_s1 + $0xa8] sm:$0xff]  ;;  %s359_s21 = scalar_lea.vmem %s3916_s10, %s2069_s18 }
  0x10   : > { %v365_v12 = vld [vmem:[%s354_s15] sm:$0xff]  ;;  %v366_v13 = vld [vmem:[%s354_s15 + $0x8] sm:$0xff]  ;;  %v2776_v48 = vpack.c.bf16 %v1893_v46, %v1892_v45  ;;  %v2780_v52 = vpack.c.bf16 %v1895_v51, %v1894_v50  ;;  %v1896_v53 = vld [vmem:[%s3907_s1 + $0xb0] sm:$0xff] }
  0x11   : > { %367 = vst.msk [vmem:[#allocation2 + $0x1] sm:$0xff] %vm360_vm0, %v365_v12  ;;  %368 = vst.msk [vmem:[#allocation2 + $0x9] sm:$0xff] %vm360_vm0, %v366_v13  ;;  %2751 = vmatpush3.bf16.msra.mxu0 %v2748_v9  ;;  %2827 = vmatpush3.bf16.msra.mxu1 %v2824_v22  ;;  %v1897_v54 = vld [vmem:[%s3907_s1 + $0xb8] sm:$0xff]  ;;  %v1906_v56 = vld [vmem:[%s3908_s2 + $0x80] sm:$0xff] }
  0x12   : > { %2753 = vmatprep.subr.bf16.mxu0 %v2752_v15  ;;  %2829 = vmatprep.subr.bf16.mxu1 %v2828_v29  ;;  %v2784_v55 = vpack.c.bf16 %v1897_v54, %v1896_v53  ;;  %v1907_v57 = vld [vmem:[%s3908_s2 + $0x88] sm:$0xff]  ;;  %v1908_v59 = vld [vmem:[%s3908_s2 + $0x90] sm:$0xff]  ;;  %v1909_v60 = vld [vmem:[%s3908_s2 + $0x98] sm:$0xff] }
  0x13   : > { %v2788_v58 = vpack.c.bf16 %v1907_v57, %v1906_v56  ;;  %v2792_v62 = vpack.c.bf16 %v1909_v60, %v1908_v59  ;;  %v1910_v63 = vld [vmem:[%s3908_s2 + $0xa0] sm:$0xff]  ;;  %v1911_v0 = vld [vmem:[%s3908_s2 + $0xa8] sm:$0xff]  ;;  %v1912_v2 = vld [vmem:[%s3908_s2 + $0xb0] sm:$0xff] }
  0x14   : > { %v2796_v1 = vpack.c.bf16 %v1911_v0, %v1910_v63  ;;  %v1913_v3 = vld [vmem:[%s3908_s2 + $0xb8] sm:$0xff]  ;;  %v1914_v5 = vld [vmem:[%s3908_s2 + $0xc0] sm:$0xff]  ;;  %v1915_v6 = vld [vmem:[%s3908_s2 + $0xc8] sm:$0xff] }
  0x15   : > { %2755 = vmatpush3.bf16.msra.mxu0 %v2752_v15  ;;  %2831 = vmatpush3.bf16.msra.mxu1 %v2828_v29  ;;  %v2800_v4 = vpack.c.bf16 %v1913_v3, %v1912_v2  ;;  %v2804_v7 = vpack.c.bf16 %v1915_v6, %v1914_v5  ;;  %v1916_v8 = vld [vmem:[%s3908_s2 + $0xd0] sm:$0xff]  ;;  %v1917_v9 = vld [vmem:[%s3908_s2 + $0xd8] sm:$0xff]  ;;  %v679_v11 = vld [vmem:[%s3908_s2 + $0x40] sm:$0xff] }
  0x16   : > { %2757 = vmatprep.subr.bf16.mxu0 %v2756_v25  ;;  %2833 = vmatprep.subr.bf16.mxu1 %v2832_v37  ;;  %v2808_v10 = vpack.c.bf16 %v1917_v9, %v1916_v8  ;;  %v680_v12 = vld [vmem:[%s3908_s2 + $0x48] sm:$0xff]  ;;  %v1918_v14 = vld [vmem:[%s3908_s2 + $0xe0] sm:$0xff]  ;;  %v681_v17 = vld [vmem:[%s3908_s2 + $0x50] sm:$0xff] }
  0x17   : > { %v2836_v13 = vpack.c.bf16 %v680_v12, %v679_v11  ;;  %v1919_v15 = vld [vmem:[%s3908_s2 + $0xe8] sm:$0xff]  ;;  %v682_v18 = vld [vmem:[%s3908_s2 + $0x58] sm:$0xff]  ;;  %v1920_v20 = vld [vmem:[%s3908_s2 + $0xf0] sm:$0xff] }
  0x18   : > { %v397_v26 = vld [vmem:[#allocation2 + $0x1] sm:$0xff]  ;;  %v398_v32 = vld [vmem:[#allocation2 + $0x9] sm:$0xff]  ;;  %v2812_v16 = vpack.c.bf16 %v1919_v15, %v1918_v14  ;;  %v2840_v19 = vpack.c.bf16 %v682_v18, %v681_v17  ;;  %v1921_v21 = vld [vmem:[%s3908_s2 + $0xf8] sm:$0xff] }
  0x19   : > { %2314 = vmatprep.mubr.msk.f32.mxu0 %vm360_vm0, %v397_v26  ;;  %v395_v34 = vld [vmem:[#allocation2] sm:$0xff]  ;;  %2835 = vmatpush3.bf16.msra.mxu1 %v2832_v37  ;;  %v396_v47 = vld [vmem:[#allocation2 + $0x8] sm:$0xff]  ;;  %v2816_v22 = vpack.c.bf16 %v1921_v21, %v1920_v20  ;;  %v685_v26 = vld [vmem:[%s3908_s2 + $0x70] sm:$0xff] }
  0x1a   : > { %2315 = vmatmul.mubr.msk.f32.vlgmr.msra.gmra.mrb[0].mxu0 %vm360_vm0, %v398_v32  ;;  %v561_v49 = vld [vmem:[#allocation2 + $0x2] sm:$0xff]  ;;  %v562_v61 = vld [vmem:[#allocation2 + $0xa] sm:$0xff]  ;;  %2837 = vmatprep.subr.bf16.mxu1 %v2836_v13  ;;  %v686_v27 = vld [vmem:[%s3908_s2 + $0x78] sm:$0xff] }
  0x1b   : > { %2759 = vmatpush3.bf16.msra.mxu0 %v2756_v25  ;;  %2333 = vmatprep.mubr.msk.f32.mxu0 %vm360_vm0, %v395_v34  ;;  %v683_v23 = vld [vmem:[%s3908_s2 + $0x60] sm:$0xff]  ;;  %v684_v24 = vld [vmem:[%s3908_s2 + $0x68] sm:$0xff]  ;;  %v2848_v28 = vpack.c.bf16 %v686_v27, %v685_v26  ;;  %v1924_v42 = vld [vmem:[%s3908_s2 + $0x110] sm:$0xff] }
  0x1c   : > { %2761 = vmatprep.subr.bf16.mxu0 %v2760_v33  ;;  %v2844_v25 = vpack.c.bf16 %v684_v24, %v683_v23  ;;  %v1922_v29 = vld [vmem:[%s3908_s2 + $0x100] sm:$0xff]  ;;  %v1923_v30 = vld [vmem:[%s3908_s2 + $0x108] sm:$0xff]  ;;  %v1925_v43 = vld [vmem:[%s3908_s2 + $0x118] sm:$0xff] }
  0x1d   : > { %2839 = vmatpush3.bf16.msra.mxu1 %v2836_v13  ;;  %v2852_v31 = vpack.c.bf16 %v1923_v30, %v1922_v29  ;;  %v1904_v32 = vld [vmem:[%s3910_s4] ss:$0 sm:$0xff]  ;;  %v2856_v46 = vpack.c.bf16 %v1925_v43, %v1924_v42  ;;  %v1928_v51 = vld [vmem:[%s3908_s2 + $0x130] sm:$0xff]  ;;  %v1937_v0 = vld [vmem:[%s3908_s2 + $0x178] sm:$0xff] }
  0x1e   : > { %2841 = vmatprep.subr.bf16.mxu1 %v2840_v19  ;;  %v1905_v34 = vld [vmem:[%s3911_s5] ss:$0 sm:$0xff]  ;;  %v1932_v57 = vld [vmem:[%s3908_s2 + $0x150] sm:$0xff]  ;;  %v1943_v9 = vld [vmem:[%s3909_s3 + $0x98] sm:$0xff] }
  0x1f   : > { %2763 = vmatpush3.bf16.msra.mxu0 %v2760_v33  ;;  %v1930_v54 = vld [vmem:[%s3908_s2 + $0x140] sm:$0xff]  ;;  %v1936_v63 = vld [vmem:[%s3908_s2 + $0x170] sm:$0xff]  ;;  %v1977_v13 = vld [vmem:[%s3909_s3 + $0x198] sm:$0xff] }
  0x20   : > { %2765 = vmatprep.subr.bf16.mxu0 %v2764_v38  ;;  %v1934_v60 = vld [vmem:[%s3908_s2 + $0x160] sm:$0xff]  ;;  %v1942_v8 = vld [vmem:[%s3909_s3 + $0x90] sm:$0xff]  ;;  %v1979_v18 = vld [vmem:[%s3909_s3 + $0x1a8] sm:$0xff] }
  0x21   : > { %2843 = vmatpush3.bf16.msra.mxu1 %v2840_v19  ;;  %v1940_v3 = vld [vmem:[%s3909_s3 + $0x80] sm:$0xff]  ;;  %v2888_v11 = vpack.c.bf16 %v1943_v9, %v1942_v8  ;;  %v1976_v12 = vld [vmem:[%s3909_s3 + $0x190] sm:$0xff]  ;;  %v1981_v24 = vld [vmem:[%s3909_s3 + $0x1b8] sm:$0xff] }
  0x22   : > { %2845 = vmatprep.subr.bf16.mxu1 %v2844_v25  ;;  %v1974_v5 = vld [vmem:[%s3909_s3 + $0x180] sm:$0xff]  ;;  %v2952_v15 = vpack.c.bf16 %v1977_v13, %v1976_v12  ;;  %v1946_v21 = vld [vmem:[%s3909_s3 + $0xb0] sm:$0xff]  ;;  %v1987_v43 = vld [vmem:[%s3909_s3 + $0x1e8] sm:$0xff] }
  0x23   : > { %2767 = vmatpush3.bf16.msra.mxu0 %v2764_v38  ;;  %v1944_v14 = vld [vmem:[%s3909_s3 + $0xa0] sm:$0xff]  ;;  %v1980_v23 = vld [vmem:[%s3909_s3 + $0x1b0] sm:$0xff]  ;;  %v1961_v8 = vld [vmem:[%s3909_s3 + $0x118] sm:$0xff] }
  0x24   : > { %2769 = vmatprep.subr.bf16.mxu0 %v2768_v41  ;;  %v1978_v17 = vld [vmem:[%s3909_s3 + $0x1a0] sm:$0xff]  ;;  %v2960_v26 = vpack.c.bf16 %v1981_v24, %v1980_v23 }
  0x25   : > { %2847 = vmatpush3.bf16.msra.mxu1 %v2844_v25  ;;  %v2956_v20 = vpack.c.bf16 %v1979_v18, %v1978_v17  ;;  %v1948_v27 = vld [vmem:[%s3909_s3 + $0xc0] sm:$0xff] }
  0x26   : > { %2849 = vmatprep.subr.bf16.mxu1 %v2848_v28  ;;  %v1982_v29 = vld [vmem:[%s3909_s3 + $0x1c0] sm:$0xff] }
  0x27   : > { %2771 = vmatpush3.bf16.msra.mxu0 %v2768_v41  ;;  %v980_v13 = vld [vmem:[%s3909_s3 + $0x20] sm:$0xff] }
  0x28   : > { %2773 = vmatprep.subr.bf16.mxu0 %v2772_v44 }
  0x29   : > { %2851 = vmatpush3.bf16.msra.mxu1 %v2848_v28  ;;  %v1949_v28 = vld [vmem:[%s3909_s3 + $0xc8] sm:$0xff] }
  0x2a   : > { %2334 = vmatmul.mubr.msk.f32.vlgmr.msra.gmra.mrb[0].mxu0 %vm360_vm0, %v396_v47  ;;  %2853 = vmatprep.subr.bf16.mxu1 %v2852_v31  ;;  %v1926_v47 = vld [vmem:[%s3908_s2 + $0x120] sm:$0xff]  ;;  %v2900_v30 = vpack.c.bf16 %v1949_v28, %v1948_v27  ;;  %v985_v27 = vld [vmem:[%s3909_s3 + $0x48] sm:$0xff] }
  0x2b   : > { %2775 = vmatpush3.bf16.msra.mxu0 %v2772_v44  ;;  %2352 = vmatprep.mubr.msk.f32.mxu0 %vm360_vm0, %v561_v49  ;;  %v1966_v28 = vld [vmem:[%s3909_s3 + $0x140] sm:$0xff] }
  0x2c   : > { %2777 = vmatprep.subr.bf16.mxu0 %v2776_v48 }
  0x2f   : > { %2779 = vmatpush3.bf16.msra.mxu0 %v2776_v48  ;;  %v1927_v48 = vld [vmem:[%s3908_s2 + $0x128] sm:$0xff] }
  0x30   : > { %2781 = vmatprep.subr.bf16.mxu0 %v2780_v52  ;;  %v2860_v50 = vpack.c.bf16 %v1927_v48, %v1926_v47  ;;  %v1988_v48 = vld [vmem:[%s3909_s3 + $0x1f0] sm:$0xff] }
  0x33   : > { %2783 = vmatpush3.bf16.msra.mxu0 %v2780_v52  ;;  %v1929_v52 = vld [vmem:[%s3908_s2 + $0x138] sm:$0xff] }
  0x34   : > { %2785 = vmatprep.subr.bf16.mxu0 %v2784_v55  ;;  %v2864_v53 = vpack.c.bf16 %v1929_v52, %v1928_v51  ;;  %v976_v51 = vld [vmem:[%s3909_s3] sm:$0xff]  ;;  %v977_v52 = vld [vmem:[%s3909_s3 + $0x8] sm:$0xff] }
  0x37   : > { %2787 = vmatpush3.bf16.msra.mxu0 %v2784_v55  ;;  %v1931_v55 = vld [vmem:[%s3908_s2 + $0x148] sm:$0xff] }
  0x38   : > { %2789 = vmatprep.subr.bf16.mxu0 %v2788_v58  ;;  %v2868_v56 = vpack.c.bf16 %v1931_v55, %v1930_v54  ;;  %v2916_v54 = vpack.c.bf16 %v977_v52, %v976_v51  ;;  %v1959_v55 = vld [vmem:[%s3909_s3 + $0x108] sm:$0xff]  ;;  %v2046_v52 = vld [vmem:[%s3909_s3 + $0x380] sm:$0xff] }
  0x39   : > { %v2011_v51 = vld [vmem:[%s3909_s3 + $0x288] sm:$0xff] }
  0x3a   : > { %2353 = vmatmul.mubr.msk.f32.vlgmr.msra.gmra.mrb[0].mxu0 %vm360_vm0, %v562_v61  ;;  %v1935_v61 = vld [vmem:[%s3908_s2 + $0x168] sm:$0xff] }
  0x3b   : > { %2791 = vmatpush3.bf16.msra.mxu0 %v2788_v58  ;;  %v1933_v58 = vld [vmem:[%s3908_s2 + $0x158] sm:$0xff] }
  0x3c   : > { %2793 = vmatprep.subr.bf16.mxu0 %v2792_v62  ;;  %v2872_v59 = vpack.c.bf16 %v1933_v58, %v1932_v57 }
  0x3f   : > { %2795 = vmatpush3.bf16.msra.mxu0 %v2792_v62  ;;  %v2876_v62 = vpack.c.bf16 %v1935_v61, %v1934_v60  ;;  %v1938_v60 = vld [vmem:[%s3912_s6] ss:$0 sm:$0xff] }
  0x40   : > { %2797 = vmatprep.subr.bf16.mxu0 %v2796_v1 }
  0x43   : > { %2799 = vmatpush3.bf16.msra.mxu0 %v2796_v1  ;;  %v2880_v1 = vpack.c.bf16 %v1937_v0, %v1936_v63  ;;  %v1939_v63 = vld [vmem:[%s3913_s7] ss:$0 sm:$0xff] }
  0x44   : > { %2801 = vmatprep.subr.bf16.mxu0 %v2800_v4 }
  0x47   : > { %2803 = vmatpush3.bf16.msra.mxu0 %v2800_v4  ;;  %v1941_v4 = vld [vmem:[%s3909_s3 + $0x88] sm:$0xff] }
  0x48   : > { %2805 = vmatprep.subr.bf16.mxu0 %v2804_v7  ;;  %v2884_v6 = vpack.c.bf16 %v1941_v4, %v1940_v3  ;;  %v978_v4 = vld [vmem:[%s3909_s3 + $0x10] sm:$0xff] }
  0x4b   : > { %2807 = vmatpush3.bf16.msra.mxu0 %v2804_v7  ;;  %v1975_v7 = vld [vmem:[%s3909_s3 + $0x188] sm:$0xff] }
  0x4c   : > { %2809 = vmatprep.subr.bf16.mxu0 %v2808_v10 }
  0x4f   : > { %2811 = vmatpush3.bf16.msra.mxu0 %v2808_v10  ;;  %v2948_v10 = vpack.c.bf16 %v1975_v7, %v1974_v5  ;;  %v1960_v7 = vld [vmem:[%s3909_s3 + $0x110] sm:$0xff] }
  0x50   : > { %2813 = vmatprep.subr.bf16.mxu0 %v2812_v16  ;;  %v2984_v12 = vpack.c.bf16 %v1961_v8, %v1960_v7  ;;  %v2017_v7 = vld [vmem:[%s3909_s3 + $0x2b8] sm:$0xff]  ;;  %v2052_v8 = vld [vmem:[%s3909_s3 + $0x3b0] sm:$0xff] }
  0x53   : > { %2815 = vmatpush3.bf16.msra.mxu0 %v2812_v16  ;;  %v1945_v16 = vld [vmem:[%s3909_s3 + $0xa8] sm:$0xff] }
  0x54   : > { %2817 = vmatprep.subr.bf16.mxu0 %v2816_v22  ;;  %v2892_v19 = vpack.c.bf16 %v1945_v16, %v1944_v14  ;;  %v981_v14 = vld [vmem:[%s3909_s3 + $0x28] sm:$0xff] }
  0x55   : > { %v1963_v16 = vld [vmem:[%s3909_s3 + $0x128] sm:$0xff]  ;;  %v2924_v17 = vpack.c.bf16 %v981_v14, %v980_v13  ;;  %v2018_v14 = vld [vmem:[%s3909_s3 + $0x2c0] sm:$0xff] }
  0x57   : > { %2819 = vmatpush3.bf16.msra.mxu0 %v2816_v22  ;;  %v1947_v22 = vld [vmem:[%s3909_s3 + $0xb8] sm:$0xff] }
  0x58   : > { %2885 = vmatprep.subr.bf16.mxu0 %v2884_v6  ;;  %v2896_v25 = vpack.c.bf16 %v1947_v22, %v1946_v21  ;;  %v1964_v21 = vld [vmem:[%s3909_s3 + $0x130] sm:$0xff]  ;;  %v1965_v22 = vld [vmem:[%s3909_s3 + $0x138] sm:$0xff] }
 0x10d   : > { %v2354_v33 = vpop.f32.mrb[0].mxu0 }
 0x10e   : > { %v654_v35 = vmul.f32 %v2354_v33, %v1904_v32  ;;  %v635_v36 = vpop.f32.mrb[1].mxu0  ;;  %v1950_v33 = vld [vmem:[%s3909_s3 + $0xd0] sm:$0xff] }
 0x10f   : > { %v653_v37 = vmul.f32 %v1904_v32, %v635_v36 }
 0x110   : > { %v663_v38 = vadd.f32 %v1905_v34, %v654_v35  ;;  %v1984_v35 = vld [vmem:[%s3909_s3 + $0x1d0] sm:$0xff] }
 0x111   : > { %v662_v39 = vadd.f32 %v1905_v34, %v653_v37  ;;  %v1951_v34 = vld [vmem:[%s3909_s3 + $0xd8] sm:$0xff] }
 0x112   : > { %v665_v40 = vmax.f32 %v663_v38, 0.0  ;;  %v2904_v36 = vpack.c.bf16 %v1951_v34, %v1950_v33  ;;  %v1985_v37 = vld [vmem:[%s3909_s3 + $0x1d8] sm:$0xff]  ;;  %v1968_v34 = vld [vmem:[%s3909_s3 + $0x150] sm:$0xff] }
 0x113   : > { %v664_v41 = vmax.f32 %v662_v39, 0.0  ;;  %v2968_v38 = vpack.c.bf16 %v1985_v37, %v1984_v35  ;;  %v1952_v39 = vld [vmem:[%s3909_s3 + $0xe0] sm:$0xff]  ;;  %v987_v33 = vld [vmem:[%s3909_s3 + $0x58] sm:$0xff] }
 0x114   : > { %670 = vst [vmem:[#allocation3 + $0x9] sm:$0xff] %v665_v40  ;;  %v1969_v35 = vld [vmem:[%s3909_s3 + $0x158] sm:$0xff] }
 0x115   : > { %669 = vst [vmem:[#allocation3 + $0x1] sm:$0xff] %v664_v41  ;;  %2387 = vmatprep.mubr.f32.mxu0 %v664_v41  ;;  %v1986_v41 = vld [vmem:[%s3909_s3 + $0x1e0] sm:$0xff]  ;;  %v3000_v37 = vpack.c.bf16 %v1969_v35, %v1968_v34  ;;  %v2060_v34 = vld [vmem:[%s3909_s3 + $0x3f0] sm:$0xff]  ;;  %v2061_v35 = vld [vmem:[%s3909_s3 + $0x3f8] sm:$0xff] }
 0x116   : > { %2388 = vmatmul.mubr.f32.vlgmr.msra.gmra.mrb[2].mxu0 %v665_v40  ;;  %v1953_v40 = vld [vmem:[%s3909_s3 + $0xe8] sm:$0xff] }
 0x117   : > { %2887 = vmatpush3.bf16.msra.mxu0 %v2884_v6  ;;  %v2908_v42 = vpack.c.bf16 %v1953_v40, %v1952_v39  ;;  %v979_v6 = vld [vmem:[%s3909_s3 + $0x18] sm:$0xff]  ;;  %v989_v39 = vld [vmem:[%s3909_s3 + $0x68] sm:$0xff]  ;;  %v1970_v40 = vld [vmem:[%s3909_s3 + $0x160] sm:$0xff] }
 0x118   : > { %2889 = vmatprep.subr.bf16.mxu0 %v2888_v11 }
 0x11b   : > { %v876_v2 = vld [vmem:[#allocation3 + $0xa] sm:$0xff]  ;;  %2891 = vmatpush3.bf16.msra.mxu0 %v2888_v11  ;;  %v2920_v11 = vpack.c.bf16 %v979_v6, %v978_v4  ;;  %v2016_v6 = vld [vmem:[%s3909_s3 + $0x2b0] sm:$0xff] }
 0x11c   : > { %v721_v44 = vld [vmem:[#allocation3] sm:$0xff]  ;;  %v722_v45 = vld [vmem:[#allocation3 + $0x8] sm:$0xff]  ;;  %2893 = vmatprep.subr.bf16.mxu0 %v2892_v19 }
 0x11d   : > { %2422 = vmatprep.mubr.f32.mxu1 %v721_v44  ;;  %v875_v49 = vld [vmem:[#allocation3 + $0x2] sm:$0xff]  ;;  %v2972_v44 = vpack.c.bf16 %v1987_v43, %v1986_v41  ;;  %v1971_v41 = vld [vmem:[%s3909_s3 + $0x168] sm:$0xff] }
 0x11e   : > { %2423 = vmatmul.mubr.f32.vlgmr.msra.gmra.mrb[0].mxu1 %v722_v45  ;;  %v1954_v45 = vld [vmem:[%s3909_s3 + $0xf0] sm:$0xff]  ;;  %v3004_v43 = vpack.c.bf16 %v1971_v41, %v1970_v40  ;;  %v2030_v40 = vld [vmem:[%s3909_s3 + $0x300] sm:$0xff]  ;;  %v2031_v41 = vld [vmem:[%s3909_s3 + $0x308] sm:$0xff] }
 0x11f   : > { %2855 = vmatpush3.bf16.msra.mxu1 %v2852_v31  ;;  %2457 = vmatprep.mubr.f32.mxu1 %v875_v49  ;;  %v1983_v31 = vld [vmem:[%s3909_s3 + $0x1c8] sm:$0xff]  ;;  %v1989_v49 = vld [vmem:[%s3909_s3 + $0x1f8] sm:$0xff] }
 0x120   : > { %2857 = vmatprep.subr.bf16.mxu1 %v2856_v46  ;;  %2895 = vmatpush3.bf16.msra.mxu0 %v2892_v19  ;;  %v2964_v32 = vpack.c.bf16 %v1983_v31, %v1982_v29  ;;  %v982_v19 = vld [vmem:[%s3909_s3 + $0x30] sm:$0xff]  ;;  %v1967_v29 = vld [vmem:[%s3909_s3 + $0x148] sm:$0xff] }
 0x121   : > { %2897 = vmatprep.subr.bf16.mxu0 %v2896_v25  ;;  %v2996_v31 = vpack.c.bf16 %v1967_v29, %v1966_v28  ;;  %v2058_v28 = vld [vmem:[%s3909_s3 + $0x3e0] sm:$0xff]  ;;  %v2059_v29 = vld [vmem:[%s3909_s3 + $0x3e8] sm:$0xff] }
 0x123   : > { %2859 = vmatpush3.bf16.msra.mxu1 %v2856_v46  ;;  %v1955_v46 = vld [vmem:[%s3909_s3 + $0xf8] sm:$0xff] }
 0x124   : > { %2861 = vmatprep.subr.bf16.mxu1 %v2860_v50  ;;  %2899 = vmatpush3.bf16.msra.mxu0 %v2896_v25  ;;  %v2912_v47 = vpack.c.bf16 %v1955_v46, %v1954_v45  ;;  %v2992_v25 = vpack.c.bf16 %v1965_v22, %v1964_v21  ;;  %v991_v45 = vld [vmem:[%s3909_s3 + $0x78] sm:$0xff]  ;;  %v1972_v46 = vld [vmem:[%s3909_s3 + $0x170] sm:$0xff] }
 0x125   : > { %2901 = vmatprep.subr.bf16.mxu0 %v2900_v30  ;;  %v2021_v21 = vld [vmem:[%s3909_s3 + $0x2d8] sm:$0xff]  ;;  %v2056_v22 = vld [vmem:[%s3909_s3 + $0x3d0] sm:$0xff] }
 0x127   : > { %2863 = vmatpush3.bf16.msra.mxu1 %v2860_v50  ;;  %v2976_v50 = vpack.c.bf16 %v1989_v49, %v1988_v48 }
 0x128   : > { %2865 = vmatprep.subr.bf16.mxu1 %v2864_v53  ;;  %2903 = vmatpush3.bf16.msra.mxu0 %v2900_v30 }
 0x129   : > { %2905 = vmatprep.subr.bf16.mxu0 %v2904_v36 }
 0x12b   : > { %2867 = vmatpush3.bf16.msra.mxu1 %v2864_v53  ;;  %v1958_v53 = vld [vmem:[%s3909_s3 + $0x100] sm:$0xff] }
 0x12c   : > { %2869 = vmatprep.subr.bf16.mxu1 %v2868_v56  ;;  %2907 = vmatpush3.bf16.msra.mxu0 %v2904_v36 }
 0x12d   : > { %2909 = vmatprep.subr.bf16.mxu0 %v2908_v42 }
 0x12f   : > { %2871 = vmatpush3.bf16.msra.mxu1 %v2868_v56  ;;  %v2980_v56 = vpack.c.bf16 %v1959_v55, %v1958_v53  ;;  %v2047_v53 = vld [vmem:[%s3909_s3 + $0x388] sm:$0xff] }
 0x130   : > { %2873 = vmatprep.subr.bf16.mxu1 %v2872_v59  ;;  %2911 = vmatpush3.bf16.msra.mxu0 %v2908_v42  ;;  %v3076_v55 = vpack.c.bf16 %v2047_v53, %v2046_v52  ;;  %v2034_v53 = vld [vmem:[%s3909_s3 + $0x320] sm:$0xff] }
 0x131   : > { %2913 = vmatprep.subr.bf16.mxu0 %v2912_v47 }
 0x133   : > { %2875 = vmatpush3.bf16.msra.mxu1 %v2872_v59 }
 0x134   : > { %2877 = vmatprep.subr.bf16.mxu1 %v2876_v62  ;;  %2915 = vmatpush3.bf16.msra.mxu0 %v2912_v47  ;;  %v1973_v47 = vld [vmem:[%s3909_s3 + $0x178] sm:$0xff] }
 0x135   : > { %2917 = vmatprep.subr.bf16.mxu0 %v2916_v54  ;;  %v3008_v49 = vpack.c.bf16 %v1973_v47, %v1972_v46  ;;  %v2032_v46 = vld [vmem:[%s3909_s3 + $0x310] sm:$0xff]  ;;  %v2033_v47 = vld [vmem:[%s3909_s3 + $0x318] sm:$0xff] }
 0x136   : > { %v3112_v52 = vpack.c.bf16 %v2033_v47, %v2032_v46 }
 0x137   : > { %2879 = vmatpush3.bf16.msra.mxu1 %v2876_v62 }
 0x138   : > { %2881 = vmatprep.subr.bf16.mxu1 %v2880_v1 }
 0x13b   : > { %2883 = vmatpush3.bf16.msra.mxu1 %v2880_v1 }
 0x13c   : > { %2949 = vmatprep.subr.bf16.mxu1 %v2948_v10 }
 0x13e   : > { %2458 = vmatmul.mubr.f32.vlgmr.msra.gmra.mrb[0].mxu1 %v876_v2 }
 0x13f   : > { %2951 = vmatpush3.bf16.msra.mxu1 %v2948_v10 }
 0x140   : > { %2953 = vmatprep.subr.bf16.mxu1 %v2952_v15 }
 0x143   : > { %2955 = vmatpush3.bf16.msra.mxu1 %v2952_v15  ;;  %v1962_v15 = vld [vmem:[%s3909_s3 + $0x120] sm:$0xff] }
 0x144   : > { %2957 = vmatprep.subr.bf16.mxu1 %v2956_v20  ;;  %v2988_v18 = vpack.c.bf16 %v1963_v16, %v1962_v15  ;;  %v2019_v15 = vld [vmem:[%s3909_s3 + $0x2c8] sm:$0xff]  ;;  %v2054_v16 = vld [vmem:[%s3909_s3 + $0x3c0] sm:$0xff] }
 0x147   : > { %2959 = vmatpush3.bf16.msra.mxu1 %v2956_v20  ;;  %v983_v20 = vld [vmem:[%s3909_s3 + $0x38] sm:$0xff] }
 0x148   : > { %2961 = vmatprep.subr.bf16.mxu1 %v2960_v26  ;;  %v2928_v24 = vpack.c.bf16 %v983_v20, %v982_v19  ;;  %v2020_v20 = vld [vmem:[%s3909_s3 + $0x2d0] sm:$0xff] }
 0x14b   : > { %2963 = vmatpush3.bf16.msra.mxu1 %v2960_v26  ;;  %v984_v26 = vld [vmem:[%s3909_s3 + $0x40] sm:$0xff] }
 0x14c   : > { %2965 = vmatprep.subr.bf16.mxu1 %v2964_v32  ;;  %v2932_v30 = vpack.c.bf16 %v985_v27, %v984_v26  ;;  %v2022_v26 = vld [vmem:[%s3909_s3 + $0x2e0] sm:$0xff]  ;;  %v2023_v27 = vld [vmem:[%s3909_s3 + $0x2e8] sm:$0xff] }
 0x14f   : > { %2967 = vmatpush3.bf16.msra.mxu1 %v2964_v32  ;;  %v986_v32 = vld [vmem:[%s3909_s3 + $0x50] sm:$0xff] }
 0x150   : > { %2969 = vmatprep.subr.bf16.mxu1 %v2968_v38  ;;  %v2936_v36 = vpack.c.bf16 %v987_v33, %v986_v32  ;;  %v2024_v32 = vld [vmem:[%s3909_s3 + $0x2f0] sm:$0xff]  ;;  %v2025_v33 = vld [vmem:[%s3909_s3 + $0x2f8] sm:$0xff] }
 0x153   : > { %2971 = vmatpush3.bf16.msra.mxu1 %v2968_v38  ;;  %v988_v38 = vld [vmem:[%s3909_s3 + $0x60] sm:$0xff] }
 0x154   : > { %2973 = vmatprep.subr.bf16.mxu1 %v2972_v44  ;;  %v2940_v42 = vpack.c.bf16 %v989_v39, %v988_v38  ;;  %v1994_v38 = vld [vmem:[%s3909_s3 + $0x200] sm:$0xff]  ;;  %v1995_v39 = vld [vmem:[%s3909_s3 + $0x208] sm:$0xff] }
 0x157   : > { %2975 = vmatpush3.bf16.msra.mxu1 %v2972_v44  ;;  %v990_v44 = vld [vmem:[%s3909_s3 + $0x70] sm:$0xff] }
 0x158   : > { %2977 = vmatprep.subr.bf16.mxu1 %v2976_v50  ;;  %v2944_v48 = vpack.c.bf16 %v991_v45, %v990_v44  ;;  %v1996_v44 = vld [vmem:[%s3909_s3 + $0x210] sm:$0xff]  ;;  %v1997_v45 = vld [vmem:[%s3909_s3 + $0x218] sm:$0xff] }
 0x15b   : > { %2979 = vmatpush3.bf16.msra.mxu1 %v2976_v50  ;;  %v2010_v50 = vld [vmem:[%s3909_s3 + $0x280] sm:$0xff] }
 0x15c   : > { %2981 = vmatprep.subr.bf16.mxu1 %v2980_v56 }
 0x1e9   : > { %v2389_v57 = vpop.f32.mrb[2].mxu0 }
 0x1ea   : > { %v791_v58 = vpop.f32.mrb[3].mxu0 }
 0x211   : > { %v2459_v59 = vpop.f32.mrb[0].mxu1 }
 0x212   : > { %v3140_v61 = vadd.f32 %v2459_v59, %v2389_v57  ;;  %v943_v62 = vpop.f32.mrb[1].mxu1  ;;  %v2013_v57 = vld [vmem:[%s3909_s3 + $0x298] sm:$0xff] }
 0x213   : > { %v3141_v0 = vadd.f32 %v943_v62, %v791_v58  ;;  %v2048_v58 = vld [vmem:[%s3909_s3 + $0x390] sm:$0xff]  ;;  %v2049_v59 = vld [vmem:[%s3909_s3 + $0x398] sm:$0xff] }
 0x214   : > { %v962_v1 = vmul.f32 %v3140_v61, %v1938_v60  ;;  %v3080_v62 = vpack.c.bf16 %v2049_v59, %v2048_v58  ;;  %v2001_v58 = vld [vmem:[%s3909_s3 + $0x238] sm:$0xff]  ;;  %v2036_v59 = vld [vmem:[%s3909_s3 + $0x330] sm:$0xff] }
 0x215   : > { %v961_v2 = vmul.f32 %v3141_v0, %v1938_v60  ;;  %v2015_v0 = vld [vmem:[%s3909_s3 + $0x2a8] sm:$0xff] }
 0x216   : > { %v971_v3 = vadd.f32 %v1939_v63, %v962_v1 }
 0x217   : > { %v970_v5 = vadd.f32 %v1939_v63, %v961_v2  ;;  %v2014_v63 = vld [vmem:[%s3909_s3 + $0x2a0] sm:$0xff] }
 0x218   : > { %v3607_v9 = vmax.f32 %v971_v3, 0.0  ;;  %v2050_v2 = vld [vmem:[%s3909_s3 + $0x3a0] sm:$0xff]  ;;  %v2051_v3 = vld [vmem:[%s3909_s3 + $0x3a8] sm:$0xff]  ;;  %v3020_v4 = vpack.c.bf16 %v2015_v0, %v2014_v63 }
 0x219   : > { %v3609_v10 = vmax.f32 %v970_v5, 0.0  ;;  %v3084_v5 = vpack.c.bf16 %v2051_v3, %v2050_v2  ;;  %v2003_v63 = vld [vmem:[%s3909_s3 + $0x248] sm:$0xff]  ;;  %v2038_v0 = vld [vmem:[%s3909_s3 + $0x340] sm:$0xff] }
 0x21a   : > { %975 = vst [vmem:[#allocation3 + $0x9] sm:$0xff] %v3607_v9 }
 0x21b   : > { %974 = vst [vmem:[#allocation3 + $0x1] sm:$0xff] %v3609_v10  ;;  %2492 = vmatprep.mubr.f32.mxu0 %v3609_v10  ;;  %2562 = vmatprep.mubr.f32.mxu1 %v3609_v10 }
 0x21c   : > { %2493 = vmatmul.mubr.f32.vlgmr.msra.gmra.mrb[4].mxu0 %v3607_v9  ;;  %2563 = vmatmul.mubr.f32.vlgmr.msra.gmra.mrb[2].mxu1 %v3607_v9 }
 0x21d   : > { %2919 = vmatpush3.bf16.msra.mxu0 %v2916_v54  ;;  %2983 = vmatpush3.bf16.msra.mxu1 %v2980_v56  ;;  %v3012_v54 = vpack.c.bf16 %v2011_v51, %v2010_v50  ;;  %v2012_v56 = vld [vmem:[%s3909_s3 + $0x290] sm:$0xff]  ;;  %v1998_v50 = vld [vmem:[%s3909_s3 + $0x220] sm:$0xff]  ;;  %v1999_v51 = vld [vmem:[%s3909_s3 + $0x228] sm:$0xff] }
 0x21e   : > { %2921 = vmatprep.subr.bf16.mxu0 %v2920_v11  ;;  %2985 = vmatprep.subr.bf16.mxu1 %v2984_v12  ;;  %v3016_v61 = vpack.c.bf16 %v2013_v57, %v2012_v56  ;;  %v2000_v57 = vld [vmem:[%s3909_s3 + $0x230] sm:$0xff] }
 0x221   : > { %2923 = vmatpush3.bf16.msra.mxu0 %v2920_v11  ;;  %2987 = vmatpush3.bf16.msra.mxu1 %v2984_v12  ;;  %v2053_v11 = vld [vmem:[%s3909_s3 + $0x3b8] sm:$0xff]  ;;  %v3024_v12 = vpack.c.bf16 %v2017_v7, %v2016_v6  ;;  %v2040_v6 = vld [vmem:[%s3909_s3 + $0x350] sm:$0xff] }
 0x222   : > { %v1009_v23 = vld [vmem:[#allocation3] sm:$0xff]  ;;  %2925 = vmatprep.subr.bf16.mxu0 %v2924_v17  ;;  %2989 = vmatprep.subr.bf16.mxu1 %v2988_v18  ;;  %v1010_v60 = vld [vmem:[#allocation3 + $0x8] sm:$0xff]  ;;  %v3088_v13 = vpack.c.bf16 %v2053_v11, %v2052_v8 }
 0x223   : > { %2527 = vmatprep.mubr.f32.mxu0 %v1009_v23  ;;  %2597 = vmatprep.mubr.f32.mxu1 %v1009_v23  ;;  %v1432_v1 = vld [vmem:[#allocation3 + $0x2] sm:$0xff] }
 0x224   : > { %v2057_v23 = vld [vmem:[%s3909_s3 + $0x3d8] sm:$0xff] }
 0x225   : > { %2927 = vmatpush3.bf16.msra.mxu0 %v2924_v17  ;;  %2991 = vmatpush3.bf16.msra.mxu1 %v2988_v18  ;;  %v2055_v17 = vld [vmem:[%s3909_s3 + $0x3c8] sm:$0xff]  ;;  %v3028_v18 = vpack.c.bf16 %v2019_v15, %v2018_v14  ;;  %v2041_v7 = vld [vmem:[%s3909_s3 + $0x358] sm:$0xff]  ;;  %v2042_v14 = vld [vmem:[%s3909_s3 + $0x360] sm:$0xff] }
 0x226   : > { %2929 = vmatprep.subr.bf16.mxu0 %v2928_v24  ;;  %2993 = vmatprep.subr.bf16.mxu1 %v2992_v25  ;;  %v3092_v19 = vpack.c.bf16 %v2055_v17, %v2054_v16  ;;  %v3128_v11 = vpack.c.bf16 %v2041_v7, %v2040_v6  ;;  %v2043_v15 = vld [vmem:[%s3909_s3 + $0x368] sm:$0xff] }
 0x227   : > { %v3132_v17 = vpack.c.bf16 %v2043_v15, %v2042_v14 }
 0x229   : > { %2931 = vmatpush3.bf16.msra.mxu0 %v2928_v24  ;;  %2995 = vmatpush3.bf16.msra.mxu1 %v2992_v25  ;;  %v3032_v24 = vpack.c.bf16 %v2021_v21, %v2020_v20  ;;  %v3096_v25 = vpack.c.bf16 %v2057_v23, %v2056_v22  ;;  %v2044_v20 = vld [vmem:[%s3909_s3 + $0x370] sm:$0xff]  ;;  %v2045_v21 = vld [vmem:[%s3909_s3 + $0x378] sm:$0xff] }
 0x22a   : > { %2933 = vmatprep.subr.bf16.mxu0 %v2932_v30  ;;  %2997 = vmatprep.subr.bf16.mxu1 %v2996_v31  ;;  %v3136_v23 = vpack.c.bf16 %v2045_v21, %v2044_v20 }
 0x22d   : > { %2935 = vmatpush3.bf16.msra.mxu0 %v2932_v30  ;;  %2999 = vmatpush3.bf16.msra.mxu1 %v2996_v31  ;;  %v3036_v30 = vpack.c.bf16 %v2023_v27, %v2022_v26  ;;  %v3100_v31 = vpack.c.bf16 %v2059_v29, %v2058_v28  ;;  %v1957_v26 = vld [vmem:[%s3915_s9] ss:$0 sm:$0xff] }
 0x22e   : > { %2937 = vmatprep.subr.bf16.mxu0 %v2936_v36  ;;  %3001 = vmatprep.subr.bf16.mxu1 %v3000_v37 }
 0x231   : > { %2939 = vmatpush3.bf16.msra.mxu0 %v2936_v36  ;;  %3003 = vmatpush3.bf16.msra.mxu1 %v3000_v37  ;;  %v3040_v36 = vpack.c.bf16 %v2025_v33, %v2024_v32  ;;  %v3104_v37 = vpack.c.bf16 %v2061_v35, %v2060_v34 }
 0x232   : > { %2941 = vmatprep.subr.bf16.mxu0 %v2940_v42  ;;  %3005 = vmatprep.subr.bf16.mxu1 %v3004_v43 }
 0x235   : > { %2943 = vmatpush3.bf16.msra.mxu0 %v2940_v42  ;;  %3007 = vmatpush3.bf16.msra.mxu1 %v3004_v43  ;;  %v3044_v42 = vpack.c.bf16 %v1995_v39, %v1994_v38  ;;  %v3108_v43 = vpack.c.bf16 %v2031_v41, %v2030_v40 }
 0x236   : > { %2945 = vmatprep.subr.bf16.mxu0 %v2944_v48  ;;  %3009 = vmatprep.subr.bf16.mxu1 %v3008_v49 }
 0x239   : > { %2947 = vmatpush3.bf16.msra.mxu0 %v2944_v48  ;;  %3011 = vmatpush3.bf16.msra.mxu1 %v3008_v49  ;;  %v1433_v48 = vld [vmem:[#allocation3 + $0xa] sm:$0xff]  ;;  %v3048_v49 = vpack.c.bf16 %v1997_v45, %v1996_v44 }
 0x23a   : > { %3013 = vmatprep.subr.bf16.mxu0 %v3012_v54  ;;  %3077 = vmatprep.subr.bf16.mxu1 %v3076_v55 }
 0x23c   : > { %2528 = vmatmul.mubr.f32.vlgmr.msra.gmra.mrb[4].mxu0 %v1010_v60  ;;  %2598 = vmatmul.mubr.f32.vlgmr.msra.gmra.mrb[2].mxu1 %v1010_v60  ;;  %v2037_v60 = vld [vmem:[%s3909_s3 + $0x338] sm:$0xff] }
 0x23d   : > { %3015 = vmatpush3.bf16.msra.mxu0 %v3012_v54  ;;  %2632 = vmatprep.mubr.f32.mxu0 %v1432_v1  ;;  %v2035_v54 = vld [vmem:[%s3909_s3 + $0x328] sm:$0xff] }
 0x23e   : > { %3079 = vmatpush3.bf16.msra.mxu1 %v3076_v55  ;;  %2702 = vmatprep.mubr.f32.mxu1 %v1432_v1  ;;  %v3052_v55 = vpack.c.bf16 %v1999_v51, %v1998_v50  ;;  %v3116_v56 = vpack.c.bf16 %v2035_v54, %v2034_v53  ;;  %v2039_v1 = vld [vmem:[%s3909_s3 + $0x348] sm:$0xff] }
 0x23f   : > { %3017 = vmatprep.subr.bf16.mxu0 %v3016_v61  ;;  %3081 = vmatprep.subr.bf16.mxu1 %v3080_v62  ;;  %v3124_v3 = vpack.c.bf16 %v2039_v1, %v2038_v0 }
 0x241   : > { %3019 = vmatpush3.bf16.msra.mxu0 %v3016_v61  ;;  %v3120_v61 = vpack.c.bf16 %v2037_v60, %v2036_v59 }
 0x242   : > { %3083 = vmatpush3.bf16.msra.mxu1 %v3080_v62  ;;  %3021 = vmatprep.subr.bf16.mxu0 %v3020_v4  ;;  %v2002_v62 = vld [vmem:[%s3909_s3 + $0x240] sm:$0xff] }
 0x243   : > { %3085 = vmatprep.subr.bf16.mxu1 %v3084_v5  ;;  %v3060_v2 = vpack.c.bf16 %v2003_v63, %v2002_v62 }
 0x245   : > { %3023 = vmatpush3.bf16.msra.mxu0 %v3020_v4  ;;  %v2004_v4 = vld [vmem:[%s3909_s3 + $0x250] sm:$0xff] }
 0x246   : > { %3087 = vmatpush3.bf16.msra.mxu1 %v3084_v5  ;;  %3025 = vmatprep.subr.bf16.mxu0 %v3024_v12  ;;  %v2005_v5 = vld [vmem:[%s3909_s3 + $0x258] sm:$0xff] }
 0x247   : > { %3089 = vmatprep.subr.bf16.mxu1 %v3088_v13  ;;  %v3064_v8 = vpack.c.bf16 %v2005_v5, %v2004_v4 }
 0x249   : > { %3027 = vmatpush3.bf16.msra.mxu0 %v3024_v12  ;;  %v2006_v12 = vld [vmem:[%s3909_s3 + $0x260] sm:$0xff] }
 0x24a   : > { %3091 = vmatpush3.bf16.msra.mxu1 %v3088_v13  ;;  %3029 = vmatprep.subr.bf16.mxu0 %v3028_v18  ;;  %v2007_v13 = vld [vmem:[%s3909_s3 + $0x268] sm:$0xff] }
 0x24b   : > { %3093 = vmatprep.subr.bf16.mxu1 %v3092_v19  ;;  %v3068_v16 = vpack.c.bf16 %v2007_v13, %v2006_v12 }
 0x24d   : > { %3031 = vmatpush3.bf16.msra.mxu0 %v3028_v18  ;;  %v2008_v18 = vld [vmem:[%s3909_s3 + $0x270] sm:$0xff] }
 0x24e   : > { %3095 = vmatpush3.bf16.msra.mxu1 %v3092_v19  ;;  %3033 = vmatprep.subr.bf16.mxu0 %v3032_v24  ;;  %v2009_v19 = vld [vmem:[%s3909_s3 + $0x278] sm:$0xff] }
 0x24f   : > { %3097 = vmatprep.subr.bf16.mxu1 %v3096_v25  ;;  %v3072_v22 = vpack.c.bf16 %v2009_v19, %v2008_v18 }
 0x251   : > { %3035 = vmatpush3.bf16.msra.mxu0 %v3032_v24  ;;  %v1956_v24 = vld [vmem:[%s3914_s8] ss:$0 sm:$0xff] }
 0x252   : > { %3099 = vmatpush3.bf16.msra.mxu1 %v3096_v25  ;;  %3037 = vmatprep.subr.bf16.mxu0 %v3036_v30 }
 0x253   : > { %3101 = vmatprep.subr.bf16.mxu1 %v3100_v31 }
 0x255   : > { %3039 = vmatpush3.bf16.msra.mxu0 %v3036_v30 }
 0x256   : > { %3103 = vmatpush3.bf16.msra.mxu1 %v3100_v31  ;;  %3041 = vmatprep.subr.bf16.mxu0 %v3040_v36 }
 0x257   : > { %3105 = vmatprep.subr.bf16.mxu1 %v3104_v37 }
 0x259   : > { %3043 = vmatpush3.bf16.msra.mxu0 %v3040_v36 }
 0x25a   : > { %3107 = vmatpush3.bf16.msra.mxu1 %v3104_v37  ;;  %3045 = vmatprep.subr.bf16.mxu0 %v3044_v42 }
 0x25b   : > { %3109 = vmatprep.subr.bf16.mxu1 %v3108_v43 }
 0x25c   : > { %2633 = vmatmul.mubr.f32.vlgmr.msra.gmra.mrb[6].mxu0 %v1433_v48 }
 0x25d   : > { %2703 = vmatmul.mubr.f32.vlgmr.msra.gmra.mrb[4].mxu1 %v1433_v48  ;;  %3047 = vmatpush3.bf16.msra.mxu0 %v3044_v42 }
 0x25e   : > { %2667 = vmatprep.mubr.f32.mxu0 %v3609_v10  ;;  %3111 = vmatpush3.bf16.msra.mxu1 %v3108_v43 }
 0x25f   : > { %2737 = vmatprep.mubr.f32.mxu1 %v3609_v10  ;;  %3049 = vmatprep.subr.bf16.mxu0 %v3048_v49  ;;  %v3056_v10 = vpack.c.bf16 %v2001_v58, %v2000_v57 }
 0x260   : > { %3113 = vmatprep.subr.bf16.mxu1 %v3112_v52 }
 0x261   : > { %3051 = vmatpush3.bf16.msra.mxu0 %v3048_v49 }
 0x262   : > { %3115 = vmatpush3.bf16.msra.mxu1 %v3112_v52  ;;  %3053 = vmatprep.subr.bf16.mxu0 %v3052_v55 }
 0x263   : > { %3117 = vmatprep.subr.bf16.mxu1 %v3116_v56 }
 0x265   : > { %3055 = vmatpush3.bf16.msra.mxu0 %v3052_v55 }
 0x266   : > { %3119 = vmatpush3.bf16.msra.mxu1 %v3116_v56  ;;  %3057 = vmatprep.subr.bf16.mxu0 %v3056_v10 }
 0x267   : > { %3121 = vmatprep.subr.bf16.mxu1 %v3120_v61 }
 0x269   : > { %3059 = vmatpush3.bf16.msra.mxu0 %v3056_v10 }
 0x26a   : > { %3123 = vmatpush3.bf16.msra.mxu1 %v3120_v61  ;;  %3061 = vmatprep.subr.bf16.mxu0 %v3060_v2 }
 0x26b   : > { %3125 = vmatprep.subr.bf16.mxu1 %v3124_v3 }
 0x26d   : > { %3063 = vmatpush3.bf16.msra.mxu0 %v3060_v2 }
 0x26e   : > { %3127 = vmatpush3.bf16.msra.mxu1 %v3124_v3  ;;  %3065 = vmatprep.subr.bf16.mxu0 %v3064_v8 }
 0x26f   : > { %3129 = vmatprep.subr.bf16.mxu1 %v3128_v11 }
 0x271   : > { %3067 = vmatpush3.bf16.msra.mxu0 %v3064_v8 }
 0x272   : > { %3131 = vmatpush3.bf16.msra.mxu1 %v3128_v11  ;;  %3069 = vmatprep.subr.bf16.mxu0 %v3068_v16 }
 0x273   : > { %3133 = vmatprep.subr.bf16.mxu1 %v3132_v17 }
 0x275   : > { %3071 = vmatpush3.bf16.msra.mxu0 %v3068_v16 }
 0x276   : > { %3135 = vmatpush3.bf16.msra.mxu1 %v3132_v17  ;;  %3073 = vmatprep.subr.bf16.mxu0 %v3072_v22 }
 0x277   : > { %3137 = vmatprep.subr.bf16.mxu1 %v3136_v23 }
 0x279   : > { %3075 = vmatpush3.bf16.msra.mxu0 %v3072_v22 }
 0x27a   : > { %3139 = vmatpush3.bf16.msra.mxu1 %v3136_v23 }
 0x27c   : > { %2668 = vmatmul.mubr.f32.vlgmr.msra.gmra.mrb[6].mxu0 %v3607_v9 }
 0x27d   : > { %2738 = vmatmul.mubr.f32.vlgmr.msra.gmra.mrb[4].mxu1 %v3607_v9 }
 0x30f   : > { %v2529_v25 = vpop.f32.mrb[4].mxu0  ;;  %v2599_v27 = vpop.f32.mrb[2].mxu1 }
 0x310   : > { %v1171_v28 = vmul.f32 %v2529_v25, %v1956_v24  ;;  %v1381_v29 = vmul.f32 %v2599_v27, %v1956_v24  ;;  %v1154_v30 = vpop.f32.mrb[5].mxu0  ;;  %v1364_v31 = vpop.f32.mrb[3].mxu1 }
 0x311   : > { %v1170_v32 = vmul.f32 %v1956_v24, %v1154_v30  ;;  %v1380_v33 = vmul.f32 %v1956_v24, %v1364_v31 }
 0x312   : > { %v1180_v34 = vadd.f32 %v1957_v26, %v1171_v28  ;;  %v1390_v35 = vadd.f32 %v1957_v26, %v1381_v29 }
 0x313   : > { %v1179_v9 = vadd.f32 %v1957_v26, %v1170_v32  ;;  %v1389_v36 = vadd.f32 %v1957_v26, %v1380_v33 }
 0x314   : > { %v1182_v37 = vmax.f32 %v1180_v34, 0.0  ;;  %v1392_v38 = vmax.f32 %v1390_v35, 0.0 }
 0x315   : > { %v1181_v39 = vmax.f32 %v1179_v9, 0.0  ;;  %v1391_v40 = vmax.f32 %v1389_v36, 0.0 }
 0x316   : > { %1184 = vst.msk [vmem:[%s359_s21 + $0x8] sm:$0xff] %vm360_vm0, %v1182_v37  ;;  %1993 = vst.msk [vmem:[%s359_s21 + $0x18] sm:$0xff] %vm360_vm0, %v1392_v38 }
 0x317   : > { %1183 = vst.msk [vmem:[%s359_s21] sm:$0xff] %vm360_vm0, %v1181_v39  ;;  %1992 = vst.msk [vmem:[%s359_s21 + $0x10] sm:$0xff] %vm360_vm0, %v1391_v40 }
 0x34f   : > { %v2669_v41 = vpop.f32.mrb[6].mxu0 }
 0x350   : > { %v1592_v42 = vmul.f32 %v2669_v41, %v1956_v24  ;;  %v2739_v43 = vpop.f32.mrb[4].mxu1  ;;  %v1575_v44 = vpop.f32.mrb[7].mxu0 }
 0x351   : > { %v1803_v45 = vmul.f32 %v2739_v43, %v1956_v24  ;;  %v1591_v46 = vmul.f32 %v1956_v24, %v1575_v44  ;;  %v1786_v47 = vpop.f32.mrb[5].mxu1 }
 0x352   : > { %v1601_v48 = vadd.f32 %v1957_v26, %v1592_v42  ;;  %v1802_v49 = vmul.f32 %v1956_v24, %v1786_v47 }
 0x353   : > { %v1812_v50 = vadd.f32 %v1957_v26, %v1803_v45  ;;  %v1600_v51 = vadd.f32 %v1957_v26, %v1591_v46 }
 0x354   : > { %v1603_v52 = vmax.f32 %v1601_v48, 0.0  ;;  %v1811_v53 = vadd.f32 %v1957_v26, %v1802_v49 }
 0x355   : > { %v1814_v54 = vmax.f32 %v1812_v50, 0.0  ;;  %v1602_v55 = vmax.f32 %v1600_v51, 0.0 }
 0x356   : > { %2029 = vst.msk [vmem:[%s359_s21 + $0x28] sm:$0xff] %vm360_vm0, %v1603_v52  ;;  %v1813_v56 = vmax.f32 %v1811_v53, 0.0 }
 0x357   : > { %2065 = vst.msk [vmem:[%s359_s21 + $0x38] sm:$0xff] %vm360_vm0, %v1814_v54  ;;  %2028 = vst.msk [vmem:[%s359_s21 + $0x20] sm:$0xff] %vm360_vm0, %v1602_v55 }
 0x358   : > { %2064 = vst.msk [vmem:[%s359_s21 + $0x30] sm:$0xff] %vm360_vm0, %v1813_v56 }
 0x359 PF: > { %s20_s13 = sadd.s32 1, %s3171_s13  }
 0x35a   : > { %p17_p4 = scmp.ge.s32.totalorder %s20_s13, 4  }
 0x35c   :  { %19 = sbr.rel (!%p17_p4) target bundleno = 1 (0x1), region = 104 }

</bundles_post_ra>
